<compile_context>
chip_gen: v7x
topology: tpu7x:2x2x1
jax: 0.10.0
libtpu: 0.0.40
codegen_flags: <defaults>
</compile_context>

<pallas_src>
import functools

import jax
import jax.numpy as jnp
from jax.experimental import pallas as pl
from jax.experimental.pallas import tpu as pltpu

KS = 7          # conv kernel size
PAD = KS // 2   # padding = 3


def _vmem_capacity_bytes():
    """Per-core VMEM capacity; conservative fallback if the query fails."""
    try:
        info = pltpu.get_tpu_info()
        cap = getattr(info, "vmem_capacity_bytes", None)
        if cap:
            return int(cap)
    except Exception:
        pass
    return 64 * 1024 * 1024  # v7x-sized fallback (safe on v5e/v6e too)


def _largest_divisor_leq(n, m):
    for d in range(max(1, min(n, m)), 0, -1):
        if n % d == 0:
            return d
    return 1


def _conv_sigmoid(avg_f, max_f, w_all, *, H, W, HWP):
    """sigmoid(conv7x7([avg; max])) in the flat lane-dense (1, HWP) layout.

    avg_f, max_f : (1, HWP) float32 (positions >= H*W are zero padding)
    w_all        : (2, KS*KS) float32; row 0 = avg-channel taps, row 1 = max.
    Returns (1, HWP) float32 (values at padded positions are never used).
    """
    HW = H * W
    stacked = jnp.concatenate([avg_f, max_f], axis=0)                # (2, HWP)

    # Column index of each flat position (exact small-int math in f32).
    pos = jax.lax.broadcasted_iota(jnp.int32, (1, HWP), 1)
    posf = pos.astype(jnp.float32)
    rowf = jnp.floor((posf + 0.5) * (1.0 / W))
    colf = posf - rowf * float(W)                                    # in [0, W)

    # Hoisted horizontal shifts of the stacked map: KS lane rolls + masks
    # (stacking avg+max halves rolls, masks and live vregs vs. separate maps).
    shifted = []
    for l in range(KS):
        dl = l - PAD
        if dl == 0:
            shifted.append(stacked)
        else:
            hm = (colf >= float(-dl)) & (colf <= float(W - 1 - dl))
            shifted.append(jnp.where(hm, pltpu.roll(stacked, (-dl) % HWP, 1), 0.0))

    # Tap accumulation on the stacked rows; one vertical roll + mask per k.
    acc = jnp.zeros((2, HWP), jnp.float32)
    for k in range(KS):
        dk = k - PAD
        t = w_all[:, k * KS:k * KS + 1] * shifted[0]
        for l in range(1, KS):
            t = t + w_all[:, k * KS + l:k * KS + l + 1] * shifted[l]
        if dk != 0:
            t = pltpu.roll(t, (-dk * W) % HWP, 1)
            vm = (pos >= -dk * W) & (pos < HW - dk * W)
            t = jnp.where(vm, t, 0.0)
        acc = acc + t

    y = jnp.sum(acc, axis=0, keepdims=True)      # fold avg/max rows (one reduce)
    return jax.nn.sigmoid(y)


def _fused_kernel(w_ref, x_ref, o_ref, *, H, W, C, CC, HWP):
    """One image per grid step: reduce over C, conv+sigmoid, apply."""
    n_full = C // CC
    rem = C - n_full * CC
    unroll = min(n_full, 8)                       # integer partial unroll
    pow2 = (CC & (CC - 1)) == 0

    def chunk_start(i):
        c0 = i * CC
        return pl.multiple_of(c0, CC) if pow2 else c0

    # ---- 1) channel mean / max, streamed over C chunks (lane-dense loads) ---
    def red_body(i, carry):
        ssum, smax = carry
        blk = x_ref[0, pl.ds(chunk_start(i), CC), :].astype(jnp.float32)
        return (ssum + jnp.sum(blk, axis=0, keepdims=True),
                jnp.maximum(smax, jnp.max(blk, axis=0, keepdims=True)))

    init = (jnp.zeros((1, HWP), jnp.float32),
            jnp.full((1, HWP), -jnp.inf, jnp.float32))
    ssum, smax = jax.lax.fori_loop(0, n_full, red_body, init, unroll=unroll)
    if rem:  # static ragged-tail chunk (avoids CC=1 for awkward C)
        blk = x_ref[0, pl.ds(n_full * CC, rem), :].astype(jnp.float32)
        ssum = ssum + jnp.sum(blk, axis=0, keepdims=True)
        smax = jnp.maximum(smax, jnp.max(blk, axis=0, keepdims=True))

    # ---- 2) 7x7 conv + sigmoid on the stacked [avg, max] map ----------------
    s_map = _conv_sigmoid(ssum * (1.0 / C), smax, w_ref[...], H=H, W=W, HWP=HWP)

    # ---- 3) broadcast-multiply + store, streamed over C (lane-dense vst) ----
    out_dt = o_ref.dtype
    # bf16 inputs: keep the multiply native bf16 (v6e/v7x); f32 otherwise.
    s_out = s_map.astype(jnp.bfloat16) if out_dt == jnp.bfloat16 else s_map

    def mul_body(i, carry):
        c0 = chunk_start(i)
        xb = x_ref[0, pl.ds(c0, CC), :]
        o_ref[0, pl.ds(c0, CC), :] = (xb * s_out).astype(out_dt)
        return carry

    jax.lax.fori_loop(0, n_full, mul_body, 0, unroll=unroll)
    if rem:
        c0 = n_full * CC
        xb = x_ref[0, pl.ds(c0, rem), :]
        o_ref[0, pl.ds(c0, rem), :] = (xb * s_out).astype(out_dt)


def _smap_kernel(w_ref, x_ref, s_ref, sum_sc, max_sc, *, H, W, C, HWP):
    """Split path, pass 1: running mean/max over C chunks, then conv+sigmoid."""
    cc = pl.program_id(1)

    @pl.when(cc == 0)
    def _():
        sum_sc[...] = jnp.zeros_like(sum_sc)
        max_sc[...] = jnp.full_like(max_sc, -jnp.inf)

    blk = x_ref[0].astype(jnp.float32)                              # (CCb, HWP)
    sum_sc[...] += jnp.sum(blk, axis=0, keepdims=True)
    max_sc[...] = jnp.maximum(max_sc[...], jnp.max(blk, axis=0, keepdims=True))

    @pl.when(cc == pl.num_programs(1) - 1)
    def _():
        s_ref[0] = _conv_sigmoid(sum_sc[...] * (1.0 / C), max_sc[...],
                                 w_ref[...], H=H, W=W, HWP=HWP)


def _apply_kernel(s_ref, x_ref, o_ref):
    """Split path, pass 2: o = x * s (fully parallel over batch and C chunks)."""
    out_dt = o_ref.dtype
    s = s_ref[...]                                                  # (1, 1, HWP)
    if out_dt == jnp.bfloat16:
        s = s.astype(jnp.bfloat16)
    o_ref[...] = (x_ref[...] * s).astype(out_dt)


def spatial_attention(x, w_oihw, *, force_split=False, max_cc=None):
    """CBAM SpatialAttention forward.  x: (B, C, H, W); w_oihw: (1, 2, 7, 7)."""
    B, C, H, W = x.shape
    HW = H * W
    HWP = ((HW + 127) // 128) * 128         # lane-dense flat spatial extent
    itemsize = jnp.dtype(x.dtype).itemsize

    w_cols = w_oihw.reshape(2, KS * KS).astype(jnp.float32)
    x_flat = x.reshape(B, C, HW)
    if HWP != HW:                            # zero-pad tail lanes (masked out by
        x_flat = jnp.pad(x_flat, ((0, 0), (0, 0), (0, HWP - HW)))   # conv masks)

    # Adaptive channel-chunk size (~256 KiB of vregs/chunk, sublane-dense when
    # possible); ragged tails are handled statically inside the kernel.
    if max_cc is None:
        max_cc = max(1, min(64, (256 * 1024) // (HWP * itemsize)))
        if max_cc >= 8:
            max_cc = (max_cc // 8) * 8
    max_cc = max(1, int(max_cc))
    CC = min(C, max_cc)

    # Adaptive VMEM budget: fused path holds the whole (C, HWP) image in VMEM,
    # double-buffered for input and output.  Fall back to the two-kernel split
    # when that does not fit the chip (v7x 64 MiB VMEM cliff).
    cap = _vmem_capacity_bytes()
    budget = int(cap * 0.8)
    fused_need = 4 * C * HWP * itemsize + 64 * HWP * 4 + (4 << 20)
    vmem_limit = int(min(budget, max(fused_need, 32 << 20)))
    use_split = force_split or fused_need > budget

    cost = pl.CostEstimate(
        flops=int(B * (3 * C * HWP + 4 * KS * KS * HWP)),
        transcendentals=int(B * HWP),
        bytes_accessed=int((3 if use_split else 2) * B * C * HWP * itemsize
                           + w_cols.size * 4),
    )

    if not use_split:
        # TODO(synk): for B == 1 the single "parallel" batch axis leaves one v7x
        # TensorCore idle; the split path below (forced) covers that case.
        kernel = functools.partial(_fused_kernel, H=H, W=W, C=C, CC=CC, HWP=HWP)
        out = pl.pallas_call(
            kernel,
            out_shape=jax.ShapeDtypeStruct((B, C, HWP), x.dtype),
            grid=(B,),
            in_specs=[
                pl.BlockSpec((2, KS * KS), lambda b: (0, 0)),       # conv weights
                pl.BlockSpec((1, C, HWP), lambda b: (b, 0, 0)),     # one image
            ],
            out_specs=pl.BlockSpec((1, C, HWP), lambda b: (b, 0, 0)),
            compiler_params=pltpu.CompilerParams(
                dimension_semantics=("parallel",),
                vmem_limit_bytes=vmem_limit),
            cost_estimate=cost,
        )(w_cols, x_flat)
    else:
        CCb = _largest_divisor_leq(C, max_cc)
        n_cc = C // CCb

        smap_kernel = functools.partial(_smap_kernel, H=H, W=W, C=C, HWP=HWP)
        s_map = pl.pallas_call(
            smap_kernel,
            out_shape=jax.ShapeDtypeStruct((B, 1, HWP), jnp.float32),
            grid=(B, n_cc),
            in_specs=[
                pl.BlockSpec((2, KS * KS), lambda b, c: (0, 0)),
                pl.BlockSpec((1, CCb, HWP), lambda b, c: (b, c, 0)),
            ],
            out_specs=pl.BlockSpec((1, 1, HWP), lambda b, c: (b, 0, 0)),
            scratch_shapes=[pltpu.VMEM((1, HWP), jnp.float32),   # running sum
                            pltpu.VMEM((1, HWP), jnp.float32)],  # running max
            compiler_params=pltpu.CompilerParams(
                dimension_semantics=("parallel", "arbitrary"),
                vmem_limit_bytes=vmem_limit),
        )(w_cols, x_flat)

        out = pl.pallas_call(
            _apply_kernel,
            out_shape=jax.ShapeDtypeStruct((B, C, HWP), x.dtype),
            grid=(B, n_cc),
            in_specs=[
                pl.BlockSpec((1, 1, HWP), lambda b, c: (b, 0, 0)),
                pl.BlockSpec((1, CCb, HWP), lambda b, c: (b, c, 0)),
            ],
            out_specs=pl.BlockSpec((1, CCb, HWP), lambda b, c: (b, c, 0)),
            compiler_params=pltpu.CompilerParams(
                dimension_semantics=("parallel", "parallel"),
                vmem_limit_bytes=vmem_limit),
            cost_estimate=cost,
        )(s_map, x_flat)

    if HWP != HW:
        out = out[..., :HW]
    return out.reshape(B, C, H, W)


def spatial_attention_reference(x, w_oihw):
    """Pure-JAX reference mirroring the PyTorch forward."""
    avg = jnp.mean(x, axis=1, keepdims=True)
    mx = jnp.max(x, axis=1, keepdims=True)
    y = jnp.concatenate([avg, mx], axis=1)
    y = jax.lax.conv_general_dilated(
        y, w_oihw, window_strides=(1, 1),
        padding=((PAD, PAD), (PAD, PAD)),
        dimension_numbers=("NCHW", "OIHW", "NCHW"))
    return jax.nn.sigmoid(y) * x


if __name__ == "__main__":
    key = jax.random.PRNGKey(0)
    kw, kx1, kx2 = jax.random.split(key, 3)

    fan_in = 2 * KS * KS
    w = jax.random.normal(kw, (1, 2, KS, KS), jnp.float32) * (1.0 / fan_in) ** 0.5

    # Main small test: fused single-kernel path.
    x1 = jax.random.normal(kx1, (2, 4, 16, 16), dtype=jnp.float32)
    ref1 = spatial_attention_reference(x1, w)
    out1 = jax.block_until_ready(spatial_attention(x1, w))
    assert out1.shape == x1.shape
    assert jnp.allclose(out1, ref1, atol=1e-5, rtol=1e-5), "fused path mismatch"

    # Exercise the VMEM-fallback split path (C-chunked reduce + parallel apply).
    out1s = jax.block_until_ready(
        spatial_attention(x1, w, force_split=True, max_cc=2))
    assert jnp.allclose(out1s, ref1, atol=1e-5, rtol=1e-5), "split path mismatch"

    # Non-128-multiple spatial size (HW padded), ragged C chunk tail, B == 1.
    x2 = jax.random.normal(kx2, (1, 5, 12, 12), dtype=jnp.float32)
    ref2 = spatial_attention_reference(x2, w)
    out2 = jax.block_until_ready(spatial_attention(x2, w, max_cc=2))
    assert out2.shape == x2.shape
    assert jnp.allclose(out2, ref2, atol=1e-5, rtol=1e-5), "padded path mismatch"

    print("KERNEL_OK")
</pallas_src>

<mosaic_0001>
module attributes {stable_mosaic.version = 11 : i64} {
  func.func @_fused_kernel(%arg0: i32, %arg1: memref<2x49xf32, #tpu.memory_space<vmem>>, %arg2: memref<1x4x256xf32, #tpu.memory_space<vmem>>, %arg3: memref<1x4x256xf32, #tpu.memory_space<vmem>>) attributes {dimension_semantics = [#tpu.dimension_semantics<parallel>], iteration_bounds = array<i64: 2>, scalar_prefetch = 0 : i64, scratch_operands = 0 : i64, tpu.core_type = #tpu.core_type<tc>, window_params = [{pipeline_mode = #tpu.pipeline_mode<synchronous>, transform_indices = @transform_0, window_bounds = array<i64: 2, 49>}, {transform_indices = @transform_1, window_bounds = array<i64: 1, 4, 256>}, {transform_indices = @transform_2, window_bounds = array<i64: 1, 4, 256>}]} {
    %cst = arith.constant 0.000000e+00 : f32
    %0 = vector.broadcast %cst : f32 to vector<1x256xf32>
    %cst_0 = arith.constant 0xFF800000 : f32
    %1 = vector.broadcast %cst_0 : f32 to vector<1x256xf32>
    %c0_i32 = arith.constant 0 : i32
    %c4_i32 = arith.constant 4 : i32
    %2 = arith.muli %c0_i32, %c4_i32 : i32
    %3 = tpu.assume_multiple %2, 4 : i32
    %c0 = arith.constant 0 : index
    %4 = arith.index_cast %3 : i32 to index
    %c0_1 = arith.constant 0 : index
    %5 = vector.load %arg2[%c0, %4, %c0_1] : memref<1x4x256xf32, #tpu.memory_space<vmem>>, vector<1x4x256xf32>
    %6 = vector.shape_cast %5 : vector<1x4x256xf32> to vector<4x256xf32>
    %cst_2 = arith.constant dense<0.000000e+00> : vector<256xf32>
    %7 = vector.multi_reduction <add>, %6, %cst_2 [0] : vector<4x256xf32> to vector<256xf32>
    %8 = vector.shape_cast %7 : vector<256xf32> to vector<1x256xf32>
    %9 = arith.addf %0, %8 : vector<1x256xf32>
    %cst_3 = arith.constant dense<0xFF800000> : vector<256xf32>
    %10 = vector.multi_reduction <maximumf>, %6, %cst_3 [0] : vector<4x256xf32> to vector<256xf32>
    %11 = vector.shape_cast %10 : vector<256xf32> to vector<1x256xf32>
    %12 = arith.maximumf %1, %11 : vector<1x256xf32>
    %c1_i32 = arith.constant 1 : i32
    %cst_4 = arith.constant 2.500000e-01 : f32
    %13 = vector.broadcast %cst_4 : f32 to vector<1x256xf32>
    %14 = arith.mulf %9, %13 : vector<1x256xf32>
    %c0_5 = arith.constant 0 : index
    %c0_6 = arith.constant 0 : index
    %15 = vector.load %arg1[%c0_5, %c0_6] : memref<2x49xf32, #tpu.memory_space<vmem>>, vector<2x49xf32>
    %16 = tpu.concatenate %14, %12 in 0 : vector<1x256xf32>, vector<1x256xf32> -> vector<2x256xf32>
    %17 = tpu.iota {dimensions = array<i32: 1>} : vector<1x256xi32>
    %18 = arith.sitofp %17 : vector<1x256xi32> to vector<1x256xf32>
    %cst_7 = arith.constant 5.000000e-01 : f32
    %19 = vector.broadcast %cst_7 : f32 to vector<1x256xf32>
    %20 = arith.addf %18, %19 : vector<1x256xf32>
    %cst_8 = arith.constant 6.250000e-02 : f32
    %21 = vector.broadcast %cst_8 : f32 to vector<1x256xf32>
    %22 = arith.mulf %20, %21 : vector<1x256xf32>
    %23 = math.floor %22 : vector<1x256xf32>
    %cst_9 = arith.constant 1.600000e+01 : f32
    %24 = vector.broadcast %cst_9 : f32 to vector<1x256xf32>
    %25 = arith.mulf %23, %24 : vector<1x256xf32>
    %26 = arith.subf %18, %25 : vector<1x256xf32>
    %cst_10 = arith.constant 3.000000e+00 : f32
    %27 = vector.broadcast %cst_10 : f32 to vector<1x256xf32>
    %28 = arith.cmpf oge, %26, %27 : vector<1x256xf32>
    %cst_11 = arith.constant 1.800000e+01 : f32
    %29 = vector.broadcast %cst_11 : f32 to vector<1x256xf32>
    %30 = arith.cmpf ole, %26, %29 : vector<1x256xf32>
    %31 = arith.andi %28, %30 : vector<1x256xi1>
    %c3_i32 = arith.constant 3 : i32
    %32 = tpu.dynamic_rotate %16 by %c3_i32 dim 1 : vector<2x256xf32>, i32 -> vector<2x256xf32>
    %cst_12 = arith.constant 0.000000e+00 : f32
    %33 = vector.shape_cast %31 : vector<1x256xi1> to vector<1x256xi1>
    %34 = vector.broadcast %33 : vector<1x256xi1> to vector<2x256xi1>
    %35 = vector.broadcast %cst_12 : f32 to vector<2x256xf32>
    %36 = arith.select %34, %32, %35 : vector<2x256xi1>, vector<2x256xf32>
    %cst_13 = arith.constant 2.000000e+00 : f32
    %37 = vector.broadcast %cst_13 : f32 to vector<1x256xf32>
    %38 = arith.cmpf oge, %26, %37 : vector<1x256xf32>
    %cst_14 = arith.constant 1.700000e+01 : f32
    %39 = vector.broadcast %cst_14 : f32 to vector<1x256xf32>
    %40 = arith.cmpf ole, %26, %39 : vector<1x256xf32>
    %41 = arith.andi %38, %40 : vector<1x256xi1>
    %c2_i32 = arith.constant 2 : i32
    %42 = tpu.dynamic_rotate %16 by %c2_i32 dim 1 : vector<2x256xf32>, i32 -> vector<2x256xf32>
    %cst_15 = arith.constant 0.000000e+00 : f32
    %43 = vector.shape_cast %41 : vector<1x256xi1> to vector<1x256xi1>
    %44 = vector.broadcast %43 : vector<1x256xi1> to vector<2x256xi1>
    %45 = vector.broadcast %cst_15 : f32 to vector<2x256xf32>
    %46 = arith.select %44, %42, %45 : vector<2x256xi1>, vector<2x256xf32>
    %cst_16 = arith.constant 1.000000e+00 : f32
    %47 = vector.broadcast %cst_16 : f32 to vector<1x256xf32>
    %48 = arith.cmpf oge, %26, %47 : vector<1x256xf32>
    %cst_17 = arith.constant 1.600000e+01 : f32
    %49 = vector.broadcast %cst_17 : f32 to vector<1x256xf32>
    %50 = arith.cmpf ole, %26, %49 : vector<1x256xf32>
    %51 = arith.andi %48, %50 : vector<1x256xi1>
    %c1_i32_18 = arith.constant 1 : i32
    %52 = tpu.dynamic_rotate %16 by %c1_i32_18 dim 1 : vector<2x256xf32>, i32 -> vector<2x256xf32>
    %cst_19 = arith.constant 0.000000e+00 : f32
    %53 = vector.shape_cast %51 : vector<1x256xi1> to vector<1x256xi1>
    %54 = vector.broadcast %53 : vector<1x256xi1> to vector<2x256xi1>
    %55 = vector.broadcast %cst_19 : f32 to vector<2x256xf32>
    %56 = arith.select %54, %52, %55 : vector<2x256xi1>, vector<2x256xf32>
    %cst_20 = arith.constant -1.000000e+00 : f32
    %57 = vector.broadcast %cst_20 : f32 to vector<1x256xf32>
    %58 = arith.cmpf oge, %26, %57 : vector<1x256xf32>
    %cst_21 = arith.constant 1.400000e+01 : f32
    %59 = vector.broadcast %cst_21 : f32 to vector<1x256xf32>
    %60 = arith.cmpf ole, %26, %59 : vector<1x256xf32>
    %61 = arith.andi %58, %60 : vector<1x256xi1>
    %c255_i32 = arith.constant 255 : i32
    %62 = tpu.dynamic_rotate %16 by %c255_i32 dim 1 : vector<2x256xf32>, i32 -> vector<2x256xf32>
    %cst_22 = arith.constant 0.000000e+00 : f32
    %63 = vector.shape_cast %61 : vector<1x256xi1> to vector<1x256xi1>
    %64 = vector.broadcast %63 : vector<1x256xi1> to vector<2x256xi1>
    %65 = vector.broadcast %cst_22 : f32 to vector<2x256xf32>
    %66 = arith.select %64, %62, %65 : vector<2x256xi1>, vector<2x256xf32>
    %cst_23 = arith.constant -2.000000e+00 : f32
    %67 = vector.broadcast %cst_23 : f32 to vector<1x256xf32>
    %68 = arith.cmpf oge, %26, %67 : vector<1x256xf32>
    %cst_24 = arith.constant 1.300000e+01 : f32
    %69 = vector.broadcast %cst_24 : f32 to vector<1x256xf32>
    %70 = arith.cmpf ole, %26, %69 : vector<1x256xf32>
    %71 = arith.andi %68, %70 : vector<1x256xi1>
    %c254_i32 = arith.constant 254 : i32
    %72 = tpu.dynamic_rotate %16 by %c254_i32 dim 1 : vector<2x256xf32>, i32 -> vector<2x256xf32>
    %cst_25 = arith.constant 0.000000e+00 : f32
    %73 = vector.shape_cast %71 : vector<1x256xi1> to vector<1x256xi1>
    %74 = vector.broadcast %73 : vector<1x256xi1> to vector<2x256xi1>
    %75 = vector.broadcast %cst_25 : f32 to vector<2x256xf32>
    %76 = arith.select %74, %72, %75 : vector<2x256xi1>, vector<2x256xf32>
    %cst_26 = arith.constant -3.000000e+00 : f32
    %77 = vector.broadcast %cst_26 : f32 to vector<1x256xf32>
    %78 = arith.cmpf oge, %26, %77 : vector<1x256xf32>
    %cst_27 = arith.constant 1.200000e+01 : f32
    %79 = vector.broadcast %cst_27 : f32 to vector<1x256xf32>
    %80 = arith.cmpf ole, %26, %79 : vector<1x256xf32>
    %81 = arith.andi %78, %80 : vector<1x256xi1>
    %c253_i32 = arith.constant 253 : i32
    %82 = tpu.dynamic_rotate %16 by %c253_i32 dim 1 : vector<2x256xf32>, i32 -> vector<2x256xf32>
    %cst_28 = arith.constant 0.000000e+00 : f32
    %83 = vector.shape_cast %81 : vector<1x256xi1> to vector<1x256xi1>
    %84 = vector.broadcast %83 : vector<1x256xi1> to vector<2x256xi1>
    %85 = vector.broadcast %cst_28 : f32 to vector<2x256xf32>
    %86 = arith.select %84, %82, %85 : vector<2x256xi1>, vector<2x256xf32>
    %cst_29 = arith.constant 0.000000e+00 : f32
    %87 = vector.broadcast %cst_29 : f32 to vector<2x256xf32>
    %88 = vector.extract_strided_slice %15 {offsets = [0, 0], sizes = [2, 1], strides = [1, 1]} : vector<2x49xf32> to vector<2x1xf32>
    %89 = vector.broadcast %88 : vector<2x1xf32> to vector<2x256xf32>
    %90 = arith.mulf %89, %36 : vector<2x256xf32>
    %91 = vector.extract_strided_slice %15 {offsets = [0, 1], sizes = [2, 1], strides = [1, 1]} : vector<2x49xf32> to vector<2x1xf32>
    %92 = vector.broadcast %91 : vector<2x1xf32> to vector<2x256xf32>
    %93 = arith.mulf %92, %46 : vector<2x256xf32>
    %94 = arith.addf %90, %93 : vector<2x256xf32>
    %95 = vector.extract_strided_slice %15 {offsets = [0, 2], sizes = [2, 1], strides = [1, 1]} : vector<2x49xf32> to vector<2x1xf32>
    %96 = vector.broadcast %95 : vector<2x1xf32> to vector<2x256xf32>
    %97 = arith.mulf %96, %56 : vector<2x256xf32>
    %98 = arith.addf %94, %97 : vector<2x256xf32>
    %99 = vector.extract_strided_slice %15 {offsets = [0, 3], sizes = [2, 1], strides = [1, 1]} : vector<2x49xf32> to vector<2x1xf32>
    %100 = vector.broadcast %99 : vector<2x1xf32> to vector<2x256xf32>
    %101 = arith.mulf %100, %16 : vector<2x256xf32>
    %102 = arith.addf %98, %101 : vector<2x256xf32>
    %103 = vector.extract_strided_slice %15 {offsets = [0, 4], sizes = [2, 1], strides = [1, 1]} : vector<2x49xf32> to vector<2x1xf32>
    %104 = vector.broadcast %103 : vector<2x1xf32> to vector<2x256xf32>
    %105 = arith.mulf %104, %66 : vector<2x256xf32>
    %106 = arith.addf %102, %105 : vector<2x256xf32>
    %107 = vector.extract_strided_slice %15 {offsets = [0, 5], sizes = [2, 1], strides = [1, 1]} : vector<2x49xf32> to vector<2x1xf32>
    %108 = vector.broadcast %107 : vector<2x1xf32> to vector<2x256xf32>
    %109 = arith.mulf %108, %76 : vector<2x256xf32>
    %110 = arith.addf %106, %109 : vector<2x256xf32>
    %111 = vector.extract_strided_slice %15 {offsets = [0, 6], sizes = [2, 1], strides = [1, 1]} : vector<2x49xf32> to vector<2x1xf32>
    %112 = vector.broadcast %111 : vector<2x1xf32> to vector<2x256xf32>
    %113 = arith.mulf %112, %86 : vector<2x256xf32>
    %114 = arith.addf %110, %113 : vector<2x256xf32>
    %c48_i32 = arith.constant 48 : i32
    %115 = tpu.dynamic_rotate %114 by %c48_i32 dim 1 : vector<2x256xf32>, i32 -> vector<2x256xf32>
    %c48_i32_30 = arith.constant 48 : i32
    %116 = vector.broadcast %c48_i32_30 : i32 to vector<1x256xi32>
    %117 = arith.cmpi sge, %17, %116 : vector<1x256xi32>
    %c304_i32 = arith.constant 304 : i32
    %118 = vector.broadcast %c304_i32 : i32 to vector<1x256xi32>
    %119 = arith.cmpi slt, %17, %118 : vector<1x256xi32>
    %120 = arith.andi %117, %119 : vector<1x256xi1>
    %cst_31 = arith.constant 0.000000e+00 : f32
    %121 = vector.shape_cast %120 : vector<1x256xi1> to vector<1x256xi1>
    %122 = vector.broadcast %121 : vector<1x256xi1> to vector<2x256xi1>
    %123 = vector.broadcast %cst_31 : f32 to vector<2x256xf32>
    %124 = arith.select %122, %115, %123 : vector<2x256xi1>, vector<2x256xf32>
    %125 = arith.addf %87, %124 : vector<2x256xf32>
    %126 = vector.extract_strided_slice %15 {offsets = [0, 7], sizes = [2, 1], strides = [1, 1]} : vector<2x49xf32> to vector<2x1xf32>
    %127 = vector.broadcast %126 : vector<2x1xf32> to vector<2x256xf32>
    %128 = arith.mulf %127, %36 : vector<2x256xf32>
    %129 = vector.extract_strided_slice %15 {offsets = [0, 8], sizes = [2, 1], strides = [1, 1]} : vector<2x49xf32> to vector<2x1xf32>
    %130 = vector.broadcast %129 : vector<2x1xf32> to vector<2x256xf32>
    %131 = arith.mulf %130, %46 : vector<2x256xf32>
    %132 = arith.addf %128, %131 : vector<2x256xf32>
    %133 = vector.extract_strided_slice %15 {offsets = [0, 9], sizes = [2, 1], strides = [1, 1]} : vector<2x49xf32> to vector<2x1xf32>
    %134 = vector.broadcast %133 : vector<2x1xf32> to vector<2x256xf32>
    %135 = arith.mulf %134, %56 : vector<2x256xf32>
    %136 = arith.addf %132, %135 : vector<2x256xf32>
    %137 = vector.extract_strided_slice %15 {offsets = [0, 10], sizes = [2, 1], strides = [1, 1]} : vector<2x49xf32> to vector<2x1xf32>
    %138 = vector.broadcast %137 : vector<2x1xf32> to vector<2x256xf32>
    %139 = arith.mulf %138, %16 : vector<2x256xf32>
    %140 = arith.addf %136, %139 : vector<2x256xf32>
    %141 = vector.extract_strided_slice %15 {offsets = [0, 11], sizes = [2, 1], strides = [1, 1]} : vector<2x49xf32> to vector<2x1xf32>
    %142 = vector.broadcast %141 : vector<2x1xf32> to vector<2x256xf32>
    %143 = arith.mulf %142, %66 : vector<2x256xf32>
    %144 = arith.addf %140, %143 : vector<2x256xf32>
    %145 = vector.extract_strided_slice %15 {offsets = [0, 12], sizes = [2, 1], strides = [1, 1]} : vector<2x49xf32> to vector<2x1xf32>
    %146 = vector.broadcast %145 : vector<2x1xf32> to vector<2x256xf32>
    %147 = arith.mulf %146, %76 : vector<2x256xf32>
    %148 = arith.addf %144, %147 : vector<2x256xf32>
    %149 = vector.extract_strided_slice %15 {offsets = [0, 13], sizes = [2, 1], strides = [1, 1]} : vector<2x49xf32> to vector<2x1xf32>
    %150 = vector.broadcast %149 : vector<2x1xf32> to vector<2x256xf32>
    %151 = arith.mulf %150, %86 : vector<2x256xf32>
    %152 = arith.addf %148, %151 : vector<2x256xf32>
    %c32_i32 = arith.constant 32 : i32
    %153 = tpu.dynamic_rotate %152 by %c32_i32 dim 1 : vector<2x256xf32>, i32 -> vector<2x256xf32>
    %c32_i32_32 = arith.constant 32 : i32
    %154 = vector.broadcast %c32_i32_32 : i32 to vector<1x256xi32>
    %155 = arith.cmpi sge, %17, %154 : vector<1x256xi32>
    %c288_i32 = arith.constant 288 : i32
    %156 = vector.broadcast %c288_i32 : i32 to vector<1x256xi32>
    %157 = arith.cmpi slt, %17, %156 : vector<1x256xi32>
    %158 = arith.andi %155, %157 : vector<1x256xi1>
    %cst_33 = arith.constant 0.000000e+00 : f32
    %159 = vector.shape_cast %158 : vector<1x256xi1> to vector<1x256xi1>
    %160 = vector.broadcast %159 : vector<1x256xi1> to vector<2x256xi1>
    %161 = vector.broadcast %cst_33 : f32 to vector<2x256xf32>
    %162 = arith.select %160, %153, %161 : vector<2x256xi1>, vector<2x256xf32>
    %163 = arith.addf %125, %162 : vector<2x256xf32>
    %164 = vector.extract_strided_slice %15 {offsets = [0, 14], sizes = [2, 1], strides = [1, 1]} : vector<2x49xf32> to vector<2x1xf32>
    %165 = vector.broadcast %164 : vector<2x1xf32> to vector<2x256xf32>
    %166 = arith.mulf %165, %36 : vector<2x256xf32>
    %167 = vector.extract_strided_slice %15 {offsets = [0, 15], sizes = [2, 1], strides = [1, 1]} : vector<2x49xf32> to vector<2x1xf32>
    %168 = vector.broadcast %167 : vector<2x1xf32> to vector<2x256xf32>
    %169 = arith.mulf %168, %46 : vector<2x256xf32>
    %170 = arith.addf %166, %169 : vector<2x256xf32>
    %171 = vector.extract_strided_slice %15 {offsets = [0, 16], sizes = [2, 1], strides = [1, 1]} : vector<2x49xf32> to vector<2x1xf32>
    %172 = vector.broadcast %171 : vector<2x1xf32> to vector<2x256xf32>
    %173 = arith.mulf %172, %56 : vector<2x256xf32>
    %174 = arith.addf %170, %173 : vector<2x256xf32>
    %175 = vector.extract_strided_slice %15 {offsets = [0, 17], sizes = [2, 1], strides = [1, 1]} : vector<2x49xf32> to vector<2x1xf32>
    %176 = vector.broadcast %175 : vector<2x1xf32> to vector<2x256xf32>
    %177 = arith.mulf %176, %16 : vector<2x256xf32>
    %178 = arith.addf %174, %177 : vector<2x256xf32>
    %179 = vector.extract_strided_slice %15 {offsets = [0, 18], sizes = [2, 1], strides = [1, 1]} : vector<2x49xf32> to vector<2x1xf32>
    %180 = vector.broadcast %179 : vector<2x1xf32> to vector<2x256xf32>
    %181 = arith.mulf %180, %66 : vector<2x256xf32>
    %182 = arith.addf %178, %181 : vector<2x256xf32>
    %183 = vector.extract_strided_slice %15 {offsets = [0, 19], sizes = [2, 1], strides = [1, 1]} : vector<2x49xf32> to vector<2x1xf32>
    %184 = vector.broadcast %183 : vector<2x1xf32> to vector<2x256xf32>
    %185 = arith.mulf %184, %76 : vector<2x256xf32>
    %186 = arith.addf %182, %185 : vector<2x256xf32>
    %187 = vector.extract_strided_slice %15 {offsets = [0, 20], sizes = [2, 1], strides = [1, 1]} : vector<2x49xf32> to vector<2x1xf32>
    %188 = vector.broadcast %187 : vector<2x1xf32> to vector<2x256xf32>
    %189 = arith.mulf %188, %86 : vector<2x256xf32>
    %190 = arith.addf %186, %189 : vector<2x256xf32>
    %c16_i32 = arith.constant 16 : i32
    %191 = tpu.dynamic_rotate %190 by %c16_i32 dim 1 : vector<2x256xf32>, i32 -> vector<2x256xf32>
    %c16_i32_34 = arith.constant 16 : i32
    %192 = vector.broadcast %c16_i32_34 : i32 to vector<1x256xi32>
    %193 = arith.cmpi sge, %17, %192 : vector<1x256xi32>
    %c272_i32 = arith.constant 272 : i32
    %194 = vector.broadcast %c272_i32 : i32 to vector<1x256xi32>
    %195 = arith.cmpi slt, %17, %194 : vector<1x256xi32>
    %196 = arith.andi %193, %195 : vector<1x256xi1>
    %cst_35 = arith.constant 0.000000e+00 : f32
    %197 = vector.shape_cast %196 : vector<1x256xi1> to vector<1x256xi1>
    %198 = vector.broadcast %197 : vector<1x256xi1> to vector<2x256xi1>
    %199 = vector.broadcast %cst_35 : f32 to vector<2x256xf32>
    %200 = arith.select %198, %191, %199 : vector<2x256xi1>, vector<2x256xf32>
    %201 = arith.addf %163, %200 : vector<2x256xf32>
    %202 = vector.extract_strided_slice %15 {offsets = [0, 21], sizes = [2, 1], strides = [1, 1]} : vector<2x49xf32> to vector<2x1xf32>
    %203 = vector.broadcast %202 : vector<2x1xf32> to vector<2x256xf32>
    %204 = arith.mulf %203, %36 : vector<2x256xf32>
    %205 = vector.extract_strided_slice %15 {offsets = [0, 22], sizes = [2, 1], strides = [1, 1]} : vector<2x49xf32> to vector<2x1xf32>
    %206 = vector.broadcast %205 : vector<2x1xf32> to vector<2x256xf32>
    %207 = arith.mulf %206, %46 : vector<2x256xf32>
    %208 = arith.addf %204, %207 : vector<2x256xf32>
    %209 = vector.extract_strided_slice %15 {offsets = [0, 23], sizes = [2, 1], strides = [1, 1]} : vector<2x49xf32> to vector<2x1xf32>
    %210 = vector.broadcast %209 : vector<2x1xf32> to vector<2x256xf32>
    %211 = arith.mulf %210, %56 : vector<2x256xf32>
    %212 = arith.addf %208, %211 : vector<2x256xf32>
    %213 = vector.extract_strided_slice %15 {offsets = [0, 24], sizes = [2, 1], strides = [1, 1]} : vector<2x49xf32> to vector<2x1xf32>
    %214 = vector.broadcast %213 : vector<2x1xf32> to vector<2x256xf32>
    %215 = arith.mulf %214, %16 : vector<2x256xf32>
    %216 = arith.addf %212, %215 : vector<2x256xf32>
    %217 = vector.extract_strided_slice %15 {offsets = [0, 25], sizes = [2, 1], strides = [1, 1]} : vector<2x49xf32> to vector<2x1xf32>
    %218 = vector.broadcast %217 : vector<2x1xf32> to vector<2x256xf32>
    %219 = arith.mulf %218, %66 : vector<2x256xf32>
    %220 = arith.addf %216, %219 : vector<2x256xf32>
    %221 = vector.extract_strided_slice %15 {offsets = [0, 26], sizes = [2, 1], strides = [1, 1]} : vector<2x49xf32> to vector<2x1xf32>
    %222 = vector.broadcast %221 : vector<2x1xf32> to vector<2x256xf32>
    %223 = arith.mulf %222, %76 : vector<2x256xf32>
    %224 = arith.addf %220, %223 : vector<2x256xf32>
    %225 = vector.extract_strided_slice %15 {offsets = [0, 27], sizes = [2, 1], strides = [1, 1]} : vector<2x49xf32> to vector<2x1xf32>
    %226 = vector.broadcast %225 : vector<2x1xf32> to vector<2x256xf32>
    %227 = arith.mulf %226, %86 : vector<2x256xf32>
    %228 = arith.addf %224, %227 : vector<2x256xf32>
    %229 = arith.addf %201, %228 : vector<2x256xf32>
    %230 = vector.extract_strided_slice %15 {offsets = [0, 28], sizes = [2, 1], strides = [1, 1]} : vector<2x49xf32> to vector<2x1xf32>
    %231 = vector.broadcast %230 : vector<2x1xf32> to vector<2x256xf32>
    %232 = arith.mulf %231, %36 : vector<2x256xf32>
    %233 = vector.extract_strided_slice %15 {offsets = [0, 29], sizes = [2, 1], strides = [1, 1]} : vector<2x49xf32> to vector<2x1xf32>
    %234 = vector.broadcast %233 : vector<2x1xf32> to vector<2x256xf32>
    %235 = arith.mulf %234, %46 : vector<2x256xf32>
    %236 = arith.addf %232, %235 : vector<2x256xf32>
    %237 = vector.extract_strided_slice %15 {offsets = [0, 30], sizes = [2, 1], strides = [1, 1]} : vector<2x49xf32> to vector<2x1xf32>
    %238 = vector.broadcast %237 : vector<2x1xf32> to vector<2x256xf32>
    %239 = arith.mulf %238, %56 : vector<2x256xf32>
    %240 = arith.addf %236, %239 : vector<2x256xf32>
    %241 = vector.extract_strided_slice %15 {offsets = [0, 31], sizes = [2, 1], strides = [1, 1]} : vector<2x49xf32> to vector<2x1xf32>
    %242 = vector.broadcast %241 : vector<2x1xf32> to vector<2x256xf32>
    %243 = arith.mulf %242, %16 : vector<2x256xf32>
    %244 = arith.addf %240, %243 : vector<2x256xf32>
    %245 = vector.extract_strided_slice %15 {offsets = [0, 32], sizes = [2, 1], strides = [1, 1]} : vector<2x49xf32> to vector<2x1xf32>
    %246 = vector.broadcast %245 : vector<2x1xf32> to vector<2x256xf32>
    %247 = arith.mulf %246, %66 : vector<2x256xf32>
    %248 = arith.addf %244, %247 : vector<2x256xf32>
    %249 = vector.extract_strided_slice %15 {offsets = [0, 33], sizes = [2, 1], strides = [1, 1]} : vector<2x49xf32> to vector<2x1xf32>
    %250 = vector.broadcast %249 : vector<2x1xf32> to vector<2x256xf32>
    %251 = arith.mulf %250, %76 : vector<2x256xf32>
    %252 = arith.addf %248, %251 : vector<2x256xf32>
    %253 = vector.extract_strided_slice %15 {offsets = [0, 34], sizes = [2, 1], strides = [1, 1]} : vector<2x49xf32> to vector<2x1xf32>
    %254 = vector.broadcast %253 : vector<2x1xf32> to vector<2x256xf32>
    %255 = arith.mulf %254, %86 : vector<2x256xf32>
    %256 = arith.addf %252, %255 : vector<2x256xf32>
    %c240_i32 = arith.constant 240 : i32
    %257 = tpu.dynamic_rotate %256 by %c240_i32 dim 1 : vector<2x256xf32>, i32 -> vector<2x256xf32>
    %c-16_i32 = arith.constant -16 : i32
    %258 = vector.broadcast %c-16_i32 : i32 to vector<1x256xi32>
    %259 = arith.cmpi sge, %17, %258 : vector<1x256xi32>
    %c240_i32_36 = arith.constant 240 : i32
    %260 = vector.broadcast %c240_i32_36 : i32 to vector<1x256xi32>
    %261 = arith.cmpi slt, %17, %260 : vector<1x256xi32>
    %262 = arith.andi %259, %261 : vector<1x256xi1>
    %cst_37 = arith.constant 0.000000e+00 : f32
    %263 = vector.shape_cast %262 : vector<1x256xi1> to vector<1x256xi1>
    %264 = vector.broadcast %263 : vector<1x256xi1> to vector<2x256xi1>
    %265 = vector.broadcast %cst_37 : f32 to vector<2x256xf32>
    %266 = arith.select %264, %257, %265 : vector<2x256xi1>, vector<2x256xf32>
    %267 = arith.addf %229, %266 : vector<2x256xf32>
    %268 = vector.extract_strided_slice %15 {offsets = [0, 35], sizes = [2, 1], strides = [1, 1]} : vector<2x49xf32> to vector<2x1xf32>
    %269 = vector.broadcast %268 : vector<2x1xf32> to vector<2x256xf32>
    %270 = arith.mulf %269, %36 : vector<2x256xf32>
    %271 = vector.extract_strided_slice %15 {offsets = [0, 36], sizes = [2, 1], strides = [1, 1]} : vector<2x49xf32> to vector<2x1xf32>
    %272 = vector.broadcast %271 : vector<2x1xf32> to vector<2x256xf32>
    %273 = arith.mulf %272, %46 : vector<2x256xf32>
    %274 = arith.addf %270, %273 : vector<2x256xf32>
    %275 = vector.extract_strided_slice %15 {offsets = [0, 37], sizes = [2, 1], strides = [1, 1]} : vector<2x49xf32> to vector<2x1xf32>
    %276 = vector.broadcast %275 : vector<2x1xf32> to vector<2x256xf32>
    %277 = arith.mulf %276, %56 : vector<2x256xf32>
    %278 = arith.addf %274, %277 : vector<2x256xf32>
    %279 = vector.extract_strided_slice %15 {offsets = [0, 38], sizes = [2, 1], strides = [1, 1]} : vector<2x49xf32> to vector<2x1xf32>
    %280 = vector.broadcast %279 : vector<2x1xf32> to vector<2x256xf32>
    %281 = arith.mulf %280, %16 : vector<2x256xf32>
    %282 = arith.addf %278, %281 : vector<2x256xf32>
    %283 = vector.extract_strided_slice %15 {offsets = [0, 39], sizes = [2, 1], strides = [1, 1]} : vector<2x49xf32> to vector<2x1xf32>
    %284 = vector.broadcast %283 : vector<2x1xf32> to vector<2x256xf32>
    %285 = arith.mulf %284, %66 : vector<2x256xf32>
    %286 = arith.addf %282, %285 : vector<2x256xf32>
    %287 = vector.extract_strided_slice %15 {offsets = [0, 40], sizes = [2, 1], strides = [1, 1]} : vector<2x49xf32> to vector<2x1xf32>
    %288 = vector.broadcast %287 : vector<2x1xf32> to vector<2x256xf32>
    %289 = arith.mulf %288, %76 : vector<2x256xf32>
    %290 = arith.addf %286, %289 : vector<2x256xf32>
    %291 = vector.extract_strided_slice %15 {offsets = [0, 41], sizes = [2, 1], strides = [1, 1]} : vector<2x49xf32> to vector<2x1xf32>
    %292 = vector.broadcast %291 : vector<2x1xf32> to vector<2x256xf32>
    %293 = arith.mulf %292, %86 : vector<2x256xf32>
    %294 = arith.addf %290, %293 : vector<2x256xf32>
    %c224_i32 = arith.constant 224 : i32
    %295 = tpu.dynamic_rotate %294 by %c224_i32 dim 1 : vector<2x256xf32>, i32 -> vector<2x256xf32>
    %c-32_i32 = arith.constant -32 : i32
    %296 = vector.broadcast %c-32_i32 : i32 to vector<1x256xi32>
    %297 = arith.cmpi sge, %17, %296 : vector<1x256xi32>
    %c224_i32_38 = arith.constant 224 : i32
    %298 = vector.broadcast %c224_i32_38 : i32 to vector<1x256xi32>
    %299 = arith.cmpi slt, %17, %298 : vector<1x256xi32>
    %300 = arith.andi %297, %299 : vector<1x256xi1>
    %cst_39 = arith.constant 0.000000e+00 : f32
    %301 = vector.shape_cast %300 : vector<1x256xi1> to vector<1x256xi1>
    %302 = vector.broadcast %301 : vector<1x256xi1> to vector<2x256xi1>
    %303 = vector.broadcast %cst_39 : f32 to vector<2x256xf32>
    %304 = arith.select %302, %295, %303 : vector<2x256xi1>, vector<2x256xf32>
    %305 = arith.addf %267, %304 : vector<2x256xf32>
    %306 = vector.extract_strided_slice %15 {offsets = [0, 42], sizes = [2, 1], strides = [1, 1]} : vector<2x49xf32> to vector<2x1xf32>
    %307 = vector.broadcast %306 : vector<2x1xf32> to vector<2x256xf32>
    %308 = arith.mulf %307, %36 : vector<2x256xf32>
    %309 = vector.extract_strided_slice %15 {offsets = [0, 43], sizes = [2, 1], strides = [1, 1]} : vector<2x49xf32> to vector<2x1xf32>
    %310 = vector.broadcast %309 : vector<2x1xf32> to vector<2x256xf32>
    %311 = arith.mulf %310, %46 : vector<2x256xf32>
    %312 = arith.addf %308, %311 : vector<2x256xf32>
    %313 = vector.extract_strided_slice %15 {offsets = [0, 44], sizes = [2, 1], strides = [1, 1]} : vector<2x49xf32> to vector<2x1xf32>
    %314 = vector.broadcast %313 : vector<2x1xf32> to vector<2x256xf32>
    %315 = arith.mulf %314, %56 : vector<2x256xf32>
    %316 = arith.addf %312, %315 : vector<2x256xf32>
    %317 = vector.extract_strided_slice %15 {offsets = [0, 45], sizes = [2, 1], strides = [1, 1]} : vector<2x49xf32> to vector<2x1xf32>
    %318 = vector.broadcast %317 : vector<2x1xf32> to vector<2x256xf32>
    %319 = arith.mulf %318, %16 : vector<2x256xf32>
    %320 = arith.addf %316, %319 : vector<2x256xf32>
    %321 = vector.extract_strided_slice %15 {offsets = [0, 46], sizes = [2, 1], strides = [1, 1]} : vector<2x49xf32> to vector<2x1xf32>
    %322 = vector.broadcast %321 : vector<2x1xf32> to vector<2x256xf32>
    %323 = arith.mulf %322, %66 : vector<2x256xf32>
    %324 = arith.addf %320, %323 : vector<2x256xf32>
    %325 = vector.extract_strided_slice %15 {offsets = [0, 47], sizes = [2, 1], strides = [1, 1]} : vector<2x49xf32> to vector<2x1xf32>
    %326 = vector.broadcast %325 : vector<2x1xf32> to vector<2x256xf32>
    %327 = arith.mulf %326, %76 : vector<2x256xf32>
    %328 = arith.addf %324, %327 : vector<2x256xf32>
    %329 = vector.extract_strided_slice %15 {offsets = [0, 48], sizes = [2, 1], strides = [1, 1]} : vector<2x49xf32> to vector<2x1xf32>
    %330 = vector.broadcast %329 : vector<2x1xf32> to vector<2x256xf32>
    %331 = arith.mulf %330, %86 : vector<2x256xf32>
    %332 = arith.addf %328, %331 : vector<2x256xf32>
    %c208_i32 = arith.constant 208 : i32
    %333 = tpu.dynamic_rotate %332 by %c208_i32 dim 1 : vector<2x256xf32>, i32 -> vector<2x256xf32>
    %c-48_i32 = arith.constant -48 : i32
    %334 = vector.broadcast %c-48_i32 : i32 to vector<1x256xi32>
    %335 = arith.cmpi sge, %17, %334 : vector<1x256xi32>
    %c208_i32_40 = arith.constant 208 : i32
    %336 = vector.broadcast %c208_i32_40 : i32 to vector<1x256xi32>
    %337 = arith.cmpi slt, %17, %336 : vector<1x256xi32>
    %338 = arith.andi %335, %337 : vector<1x256xi1>
    %cst_41 = arith.constant 0.000000e+00 : f32
    %339 = vector.shape_cast %338 : vector<1x256xi1> to vector<1x256xi1>
    %340 = vector.broadcast %339 : vector<1x256xi1> to vector<2x256xi1>
    %341 = vector.broadcast %cst_41 : f32 to vector<2x256xf32>
    %342 = arith.select %340, %333, %341 : vector<2x256xi1>, vector<2x256xf32>
    %343 = arith.addf %305, %342 : vector<2x256xf32>
    %cst_42 = arith.constant dense<0.000000e+00> : vector<256xf32>
    %344 = vector.multi_reduction <add>, %343, %cst_42 [0] : vector<2x256xf32> to vector<256xf32>
    %345 = vector.shape_cast %344 : vector<256xf32> to vector<1x256xf32>
    %346 = arith.negf %345 : vector<1x256xf32>
    %347 = math.exp %346 : vector<1x256xf32>
    %cst_43 = arith.constant 1.000000e+00 : f32
    %348 = vector.broadcast %cst_43 : f32 to vector<1x256xf32>
    %349 = arith.addf %348, %347 : vector<1x256xf32>
    %350 = arith.divf %348, %349 : vector<1x256xf32>
    %c0_i32_44 = arith.constant 0 : i32
    %c4_i32_45 = arith.constant 4 : i32
    %351 = arith.muli %c0_i32_44, %c4_i32_45 : i32
    %352 = tpu.assume_multiple %351, 4 : i32
    %c0_46 = arith.constant 0 : index
    %353 = arith.index_cast %352 : i32 to index
    %c0_47 = arith.constant 0 : index
    %354 = vector.load %arg2[%c0_46, %353, %c0_47] : memref<1x4x256xf32, #tpu.memory_space<vmem>>, vector<1x4x256xf32>
    %355 = vector.shape_cast %354 : vector<1x4x256xf32> to vector<4x256xf32>
    %356 = vector.broadcast %350 : vector<1x256xf32> to vector<4x256xf32>
    %357 = arith.mulf %355, %356 : vector<4x256xf32>
    %c0_48 = arith.constant 0 : index
    %358 = arith.index_cast %352 : i32 to index
    %c0_49 = arith.constant 0 : index
    %359 = vector.load %arg3[%c0_48, %358, %c0_49] : memref<1x4x256xf32, #tpu.memory_space<vmem>>, vector<1x4x256xf32>
    %360 = vector.shape_cast %359 : vector<1x4x256xf32> to vector<4x256xf32>
    %361 = vector.shape_cast %357 : vector<4x256xf32> to vector<1x4x256xf32>
    tpu.vector_store %arg3[%c0_48, %358, %c0_49], %361 {strides = array<i32>} : memref<1x4x256xf32, #tpu.memory_space<vmem>>, vector<1x4x256xf32>,
    %c1_i32_50 = arith.constant 1 : i32
    return
  }
  func.func @transform_0(%arg0: i32) -> (i32, i32) {
    %c0_i32 = arith.constant 0 : i32
    %c0_i32_0 = arith.constant 0 : i32
    %c0_i32_1 = arith.constant 0 : i32
    return %c0_i32, %c0_i32_0 : i32, i32
  }
  func.func @transform_1(%arg0: i32) -> (i32, i32, i32) {
    %c0_i32 = arith.constant 0 : i32
    %c0_i32_0 = arith.constant 0 : i32
    %c0_i32_1 = arith.constant 0 : i32
    return %arg0, %c0_i32, %c0_i32_0 : i32, i32, i32
  }
  func.func @transform_2(%arg0: i32) -> (i32, i32, i32) {
    %c0_i32 = arith.constant 0 : i32
    %c0_i32_0 = arith.constant 0 : i32
    %c0_i32_1 = arith.constant 0 : i32
    return %arg0, %c0_i32, %c0_i32_0 : i32, i32, i32
  }
}

</mosaic_0001>

<bundles_post_ra>
// kernel: tpu_custom_call.1
= control target key start
LH: loop header
LB: loop body
LE: loop exit
PB: predicated region body
PF: predicated region fallthrough
CT: control target
= control target key end

     0   :  { %7 = vsyncpa [#allocation3], 0  ;;  %s1941_s0 = inlined_call_operand.hbm [shape: f32[2,49], index: 0, kind: input, shape index: {}]   ;;  %s1942_s1 = inlined_call_operand.hbm [shape: f32[2,4,256], index: 1, kind: input, shape index: {}]   ;;  %s1943_s2 = inlined_call_operand.hbm [shape: f32[2,4,256], index: 2, kind: output, shape index: {}]  }
   0x1   :  { %8 = vsyncpa [#allocation6], 0 }
   0x2   :  { %10 = vsyncpa [#allocation6 + $0x1], 0 }
   0x3   :  { %11 = vsyncpa [#allocation4], 0 }
   0x4   :  { %13 = vsyncpa [#allocation4 + $0x1], 0  ;;  %s1392_s9 = smov 0   ;;  %s1394_s10 = smov 0  }
   0x5   :  { %s1396_s11 = smov 0   ;;  %s1398_s12 = smov 0  }
   0x6 LB: > { %s1413_s13 = sadd.s32 4294967295, %s1311_s12   ;;  %s985_s14 = sadd.s32 4294967294, %s1311_s12   ;;  %s1311_s12 = sphi %s1398_s12, %s1967_s12   ;;  %s1307_s11 = sphi %s1396_s11, %s1966_s11   ;;  %s1303_s10 = sphi %s1394_s10, %s1965_s10   ;;  %s1299_s9 = sphi %s1392_s9, %s1964_s9  }
   0x7   : > { %p60_p0 = scmp.ne.s32.totalorder %s1303_s10, %s1299_s9  ;;  %p1944_p1 = scmp.eq.s32.totalorder %s1413_s13, 0 }
   0x8   : > { %p90_p3 = scmp.eq.s32.totalorder %s985_s14, 1  ;;  %p986_p5 = scmp.ge.s32.totalorder %s1311_s12, 1 }
   0x9   : > { %p1422_p4 = por %p1944_p1, %p60_p0  ;;  %p97_p7 = scmp.lt.s32.totalorder %s1311_s12, 3 }
   0xa   : > { %p1427_p6 = por %p90_p3, %p60_p0  ;;  %s1313_s18 = smov [#allocation2]  }
   0xb   : > { %s1947_s15 = scalar_select %p1422_p4, 1, 0 }
   0xc   : > { %s1948_s16 = scalar_select %p1427_p6, 1, 0 }
   0xd   : > { %p1432_p8 = pnand %p986_p5, %p97_p7  ;;  %s110_s19 = sshll.u32 %s1313_s18, 4  ;;  %s111_s19 = int_to_ptr.vmem [resolvable:$true] %s110_s19 }
   0xe   : > { %s1440_s20 = sadd.s32 1, %s1311_s12   ;;  %s47_s24 = sadd.s32 1, %s1307_s11 }
   0xf   : > { %s1949_s17 = scalar_select %p1432_p8, 1, 0 }
  0x10   : > { %p1013_p10 = pneg %p1432_p8  ;;  %s44_s22 = ssub.s32 %s1311_s12, %s1440_s20 }
  0x11   : > { %p1450_p12 = scmp.eq.s32.totalorder %s44_s22, 0  ;;  %s1183_s27 = scalar_lea.hbm %s1941_s0, 32 }
  0x12   : > { %p1444_p11 = pnand %p1013_p10, %p1944_p1  ;;  %p1184_p0 = scmp.ne.s32.totalorder %s1941_s0, %s1183_s27 }
  0x13   : > { %s1951_s23 = scalar_select %p1450_p12, 1, 0 }
  0x14   : > { %p1185_p3 = pneg %p1444_p11  ;;  %p1190_p10 = scmp.lt.u32.totalorder %s1183_s27, %s1941_s0 }
  0x16   : > { %p1186_p5 = pnand %p1185_p3, %p1184_p0 }
  0x18   : > { %p1187_p7 = pneg %p1186_p5 }
  0x1a   : > { %p1192_p9 = pnand %p1190_p10, %p1187_p7 }
  0x1c   : > { %1195 = shalt.err (!%p1192_p9)
}
  0x1d   : > { %s1196_s4 = scalar_lea.vmem %s111_s19, 32  ;;  %p1204_p6 = scmp.lt.s32.totalorder %s111_s19, %s111_s19 }
  0x1e   : > { %p1197_p1 = scmp.ne.s32.totalorder %s111_s19, %s1196_s4  ;;  %p1205_p4 = scmp.lt.s32.totalorder %s1196_s4, %s1196_s4 }
  0x20   : > { %p1199_p2 = pnand %p1197_p1, %p1185_p3  ;;  %p1206_p8 = por %p1205_p4, %p1204_p6 }
  0x22   : > { %p1200_p13 = pneg %p1199_p2 }
  0x24   : > { %p1207_p12 = pnand %p1206_p8, %p1200_p13 }
  0x26   : > { %1210 = shalt.err (!%p1207_p12)
}
  0x27   : > { %1016 = dma.hbm_to_vmem [thread:$0]  (!%p1444_p11), %s1941_s0, 32, %s111_s19, [#allocation3]  }
  0x28   : > { %p1952_p1 = scmp.ne.s32.totalorder %s1951_s23, 0  ;;  %p55_p2 = scmp.eq.s32.totalorder %s1311_s12, 0 }
  0x29   : > { %p1953_p4 = scmp.ne.s32.totalorder %s1307_s11, %s1303_s10  ;;  %p1954_p6 = scmp.eq.s32.totalorder %s1413_s13, 1 }
  0x2a   : > { %s1476_s7 = scalar_select %p1952_p1, %s1307_s11, %s47_s24  }
  0x2b   : > { %p1484_p8 = por %p1954_p6, %p1953_p4  ;;  %p1026_p9 = scmp.lt.s32.totalorder %s1311_s12, 2 }
  0x2c   : > { %s121_s14 = sand.u32 1, %s1307_s11   ;;  %p1956_p12 = pmov %p1953_p4 }
  0x2d   : > { %s989_s18 = sshll.u32 %s121_s14, 3  ;;  %s1003_s21 = sshll.u32 %s1311_s12, 7 }
  0x2e   : > { %p56_p13 = por %p55_p2, %p1956_p12  ;;  %s1497_s19 = scalar_lea.hbm %s1942_s1, %s1003_s21 }
  0x2f   : > { %s125_s23 = scalar_lea.vmem [#allocation5], %s989_s18  ;;  %s122_s27 = scalar_lea.sflag [#allocation6], %s121_s14 }
  0x30   : > { %s133_s24 = sshll.u32 %s125_s23, 4  ;;  %p1499_p11 = pnand %p1026_p9, %p56_p13  ;;  %s1503_s24 = int_to_ptr.vmem [resolvable:$true] %s133_s24 }
  0x31   : > { %s1211_s28 = scalar_lea.hbm %s1497_s19, 128  ;;  %s1216_s3 = scalar_lea.hbm %s1942_s1, 256 }
  0x32   : > { %p1212_p0 = scmp.ne.s32.totalorder %s1497_s19, %s1211_s28  ;;  %p1213_p3 = pneg %p1499_p11 }
  0x33   : > { %p1217_p10 = scmp.lt.u32.totalorder %s1497_s19, %s1942_s1  ;;  %p1218_p1 = scmp.lt.u32.totalorder %s1216_s3, %s1211_s28 }
  0x34   : > { %p1214_p5 = pnand %p1213_p3, %p1212_p0  ;;  %p1220_p4 = scmp.lt.u32.totalorder %s1211_s28, %s1497_s19 }
  0x35   : > { %p1219_p2 = por %p1218_p1, %p1217_p10 }
  0x36   : > { %p1215_p7 = pneg %p1214_p5 }
  0x37   : > { %p1221_p6 = por %p1220_p4, %p1219_p2 }
  0x39   : > { %p1222_p9 = pnand %p1221_p6, %p1215_p7 }
  0x3b   : > { %1225 = shalt.err (!%p1222_p9)
}
  0x3c   : > { %s1226_s6 = scalar_lea.vmem %s1503_s24, 128  ;;  %s1314_s14 = smov [#allocation5]  }
  0x3d   : > { %p1227_p12 = scmp.ne.s32.totalorder %s1503_s24, %s1226_s6  ;;  %s1231_s18 = sshll.u32 %s1314_s14, 4  ;;  %s1232_s18 = int_to_ptr.vmem [resolvable:$false] %s1231_s18 }
  0x3e   : > { %s1233_s21 = scalar_lea.vmem %s1232_s18, 256  ;;  %p1234_p5 = scmp.lt.s32.totalorder %s1503_s24, %s1232_s18 }
  0x3f   : > { %p1229_p13 = pnand %p1227_p12, %p1213_p3  ;;  %p1235_p10 = scmp.lt.s32.totalorder %s1233_s21, %s1226_s6 }
  0x41   : > { %p1230_p0 = pneg %p1229_p13  ;;  %p1236_p1 = por %p1235_p10, %p1234_p5 }
  0x43   : > { %p1237_p2 = pnand %p1236_p1, %p1230_p0 }
  0x45   : > { %1240 = shalt.err (!%p1237_p2)
}
  0x46   : > { %1020 = dma.hbm_to_vmem [thread:$0]  (!%p1499_p11), %s1497_s19, 128, %s1503_s24, %s122_s27  }
  0x47   : > { %p1958_p7 = scmp.ne.s32.totalorder %s1949_s17, 0 }
  0x48   : > { %p1959_p3 = scmp.eq.s32.totalorder (!%p1958_p7), %s1413_s13, 0 }
  0x49   : > { %142 = sbr.rel (%p1958_p7) target bundleno = 568 (0x238), region = 28 }
  0x50   : > { %1286 = dma.done.wait (%p1959_p3), [#allocation3], 32   ;;  %p1960_p4 = pmov %p1959_p3 }
  0x51   : > { %s1537_s22 = sand.u32 1, %s1303_s10   ;;  %p1961_p11 = scmp.ne.s32.totalorder %s1947_s15, 0 }
  0x52   : > { %1288 = vsyncadd (%p1960_p4), [#allocation3], 4294967264  ;;  %s994_s25 = sshll.u32 %s1537_s22, 3  ;;  %s149_s23 = scalar_lea.sflag [#allocation6], %s1537_s22 }
  0x53   : > { %s1543_s19 = scalar_lea.vmem [#allocation5], %s994_s25 }
  0x54   : > { %1290 = dma.done.wait (%p1961_p11), %s149_s23, 128  }
  0x55   : > { %1292 = vsyncadd (%p1961_p11), %s149_s23, 4294967168  ;;  %v1315_v0 = vmov 1   ;;  %v1316_v1 = vmov 0   ;;  %vm180_vm0 = vcmask 1043456   ;;  %v176_v2 = vld [vmem:[%s1543_s19] sm:$0xff]  ;;  %vm214_vm1 = vcmask 1040384  }
  0x56   : > { %1124 = vset.pattern.permute.xlu1 %v1315_v0  ;;  %1123 = vset.pattern.permute.xlu0 %v1316_v1  ;;  %v178_v3 = vcombine.high %v176_v2, %v176_v2  ;;  %v181_v4 = vsel %vm180_vm0, %v176_v2, 0.0  ;;  %v197_v5 = vsel %vm180_vm0, %v176_v2, -inf  ;;  %s1317_s15 = smov 2   ;;  %s1318_s17 = smov 3   ;;  %v1554_v35 = vld [vmem:[#allocation2] sm:$0x3] }
  0x57   : > { %v182_v6 = vrot.slane %v181_v4, 4  ;;  %v198_v7 = vrot.slane %v197_v5, 4  ;;  %s1319_s24 = smov 1   ;;  %s1320_s26 = smov 127   ;;  %v1321_v37 = vmov 2   ;;  %v1324_v38 = vmov 3  }
  0x58   : > { %v188_v8 = vsel %vm180_vm0, %v178_v3, 0.0  ;;  %v204_v9 = vsel %vm180_vm0, %v178_v3, -inf  ;;  %s1322_s27 = smov 126   ;;  %s1323_s28 = smov 125   ;;  %v1325_v39 = vmov 4   ;;  %v1326_v40 = vmov 6  }
  0x59   : > { %v183_v10 = vadd.f32 %v182_v6, %v181_v4  ;;  %v189_v11 = vrot.slane %v188_v8, 4  ;;  %v199_v12 = vmax.f32 %v197_v5, %v198_v7  ;;  %v205_v13 = vrot.slane %v204_v9, 4  ;;  %s1370_s29 = smov 48   ;;  %s1371_s30 = smov 32  }
  0x5a   : > { %v1327_v41 = vmov 5   ;;  %v1328_v42 = vmov 9   ;;  %v1329_v43 = vmov 7   ;;  %v1330_v44 = vmov 10   ;;  %s1372_s3 = smov 16   ;;  %s1373_s4 = smov 112  }
  0x5b   : > { %v184_v14 = vrot.slane %v183_v10, 2  ;;  %v190_v15 = vadd.f32 %v189_v11, %v188_v8  ;;  %v200_v16 = vrot.slane %v199_v12, 2  ;;  %v206_v17 = vmax.f32 %v204_v9, %v205_v13  ;;  %s1374_s5 = smov 96   ;;  %s1375_s6 = smov 80  }
  0x5c   : > { %v1331_v45 = vmov 8   ;;  %v1332_v46 = vmov 17   ;;  %v1333_v47 = vmov 14   ;;  %v1334_v48 = vmov 12   ;;  %s1004_s14 = sshll.u32 %s1413_s13, 7  ;;  %s172_s18 = scalar_lea.vmem [#allocation7], %s994_s25 }
  0x5d   : > { %v185_v18 = vadd.f32 %v184_v14, %v183_v10  ;;  %v191_v19 = vrot.slane %v190_v15, 2  ;;  %v201_v20 = vmax.f32 %v199_v12, %v200_v16  ;;  %v207_v21 = vrot.slane %v206_v17, 2  ;;  %s903_s21 = sshll.u32 %s172_s18, 4  ;;  %s1376_s13 = smov [#allocation7]   ;;  %s1899_s21 = int_to_ptr.vmem [resolvable:$true] %s903_s21 }
  0x5e   : > { %v1335_v49 = vmov 15   ;;  %v1336_v50 = vmov 35   ;;  %v1337_v51 = vmov 16   ;;  %v1338_v52 = vmov 19   ;;  %s1245_s25 = sshll.u32 %s1376_s13, 4  ;;  %s1246_s25 = int_to_ptr.vmem [resolvable:$false] %s1245_s25 }
  0x5f   : > { %v186_v22 = vrot.slane %v185_v18, 1  ;;  %v192_v23 = vadd.f32 %v191_v19, %v190_v15  ;;  %v202_v24 = vrot.slane %v201_v20, 1  ;;  %v208_v25 = vmax.f32 %v206_v17, %v207_v21  ;;  %p1248_p13 = scmp.lt.s32.totalorder %s1899_s21, %s1246_s25 }
  0x60   : > { %v1339_v53 = vmov 11   ;;  %v1340_v54 = vmov 42   ;;  %v1341_v55 = vmov 28   ;;  %v1342_v56 = vmov 32  }
  0x61   : > { %v187_v26 = vadd.f32 %v186_v22, %v185_v18  ;;  %v193_v27 = vrot.slane %v192_v23, 1  ;;  %v203_v28 = vmax.f32 %v201_v20, %v202_v24  ;;  %v209_v30 = vrot.slane %v208_v25, 1 }
  0x62   : > { %v1343_v57 = vmov 29   ;;  %v1344_v58 = vmov 33   ;;  %v1345_v59 = vmov 18   ;;  %v1346_v60 = vmov 34  }
  0x63   : > { %v194_v29 = vadd.f32 %v193_v27, %v192_v23  ;;  %v211_v31 = vmul.f32 0.25, %v187_v26  ;;  %v210_v33 = vmax.f32 %v208_v25, %v209_v30  ;;  %v1347_v61 = vmov 30  }
  0x64   : > { %v1348_v62 = vmov 41   ;;  %v1349_v63 = vmov 36   ;;  %v1350_v0 = vmov 21   ;;  %v1351_v1 = vmov 13  }
  0x65   : > { %v1550_v32 = vsel %vm214_vm1, %v211_v31, %v203_v28  ;;  %v212_v34 = vmul.f32 0.25, %v194_v29  ;;  %v1352_v2 = vmov 24   ;;  %v1353_v3 = vmov 31  }
  0x66   : > { %257 = vrot.lane.b32.xlu1 %v1550_v32, %s1317_s15  ;;  %238 = vrot.lane.b32.xlu0 %v1550_v32, %s1318_s17  ;;  %v1354_v4 = vmov 27   ;;  %v1355_v5 = vmov 37   ;;  %v1356_v6 = vmov 48   ;;  %v1357_v7 = vmov 43  }
  0x67   : > { %v1558_v36 = vsel %vm214_vm1, %v212_v34, %v210_v33  ;;  %v1358_v8 = vmov 20   ;;  %v217_v9 = vlaneseq  ;;  %v1359_v11 = vmov 38  }
  0x68   : > { %v1360_v14 = vmov 44   ;;  %v1361_v19 = vmov 39   ;;  %v1362_v26 = vmov 45   ;;  %v1363_v31 = vmov 40  }
  0x69   : > { %v1609_v12 = vand.u32 127, %v217_v9 }
  0x6a   : > { %354 = vperm.xlu1 %1124, %v1554_v35   ;;  %276 = vrot.lane.b32.xlu0 %v1550_v32, %s1319_s24 }
  0x6b   : > { %v1617_v16 = vadd.s32 128, %v1609_v12  ;;  %v220_v17 = vcvt.s32.f32 %v1609_v12  ;;  %vm242_vm4 = vcmp.lt.s32.totalorder %v1609_v12, 3  ;;  %vm261_vm7 = vcmp.lt.s32.totalorder %v1609_v12, 2 }
  0x6c   : > { %vm280_vm11 = vcmp.lt.s32.totalorder %v1609_v12, 1 }
  0x6d   : > { %v221_v20 = vcvt.s32.f32 %v1617_v16  ;;  %v222_v22 = vadd.f32 0.5, %v220_v17 }
  0x6e   : > { %295 = vrot.lane.b32.xlu0 %v1550_v32, %s1320_s26  ;;  %259 = vrot.lane.b32.xlu1 %v1558_v36, %s1317_s15 }
  0x6f   : > { %1125 = vset.pattern.permute.xlu1 %v1321_v37  ;;  %v223_v24 = vadd.f32 0.5, %v221_v20  ;;  %v224_v25 = vmul.f32 0.0625, %v222_v22 }
  0x71   : > { %v225_v29 = vmul.f32 0.0625, %v223_v24  ;;  %v226_v30 = vfloor.f32 %v224_v25 }
  0x72   : > { %314 = vrot.lane.b32.xlu0 %v1550_v32, %s1322_s27  ;;  %278 = vrot.lane.b32.xlu1 %v1558_v36, %s1319_s24  ;;  %s889_s24 = scalar_lea.sflag [#allocation4], %s1537_s22 }
  0x73   : > { %v227_v34 = vfloor.f32 %v225_v29  ;;  %v228_v37 = vmul.f32 16.0, %v226_v30 }
  0x76   : > { %333 = vrot.lane.b32.xlu0 %v1550_v32, %s1323_s28  ;;  %297 = vrot.lane.b32.xlu1 %v1558_v36, %s1320_s26  ;;  %s1241_s26 = scalar_lea.vmem %s1899_s21, 128 }
  0x77   : > { %p1242_p6 = scmp.ne.s32.totalorder %s1899_s21, %s1241_s26 }
  0x79   : > { %p1243_p9 = pnand %p1242_p6, %p1484_p8 }
  0x7a   : > { %316 = vrot.lane.b32.xlu1 %v1558_v36, %s1322_s27  ;;  %240 = vrot.lane.b32.xlu0 %v1558_v36, %s1318_s17  ;;  %s1897_s17 = scalar_lea.hbm %s1943_s2, %s1004_s14 }
  0x7b   : > { %p1244_p12 = pneg %p1243_p9 }
  0x7e   : > { %335 = vrot.lane.b32.xlu1 %v1558_v36, %s1323_s28  ;;  %348 = vperm.xlu0 %1123, %v1554_v35  }
  0x82   : > { %362 = vperm.xlu1 %1125, %v1554_v35   ;;  %1126 = vset.pattern.permute.xlu0 %v1324_v38 }
  0x83   : > { %370 = vperm.xlu0 %1126, %v1554_v35  }
  0x86   : > { %1127 = vset.pattern.permute.xlu1 %v1325_v39  ;;  %v1364_v39 = vmov 46  }
  0x87   : > { %378 = vperm.xlu1 %1127, %v1554_v35   ;;  %1129 = vset.pattern.permute.xlu0 %v1326_v40 }
  0x88   : > { %394 = vperm.xlu0 %1129, %v1554_v35  }
  0x8b   : > { %1128 = vset.pattern.permute.xlu1 %v1327_v41  ;;  %v229_v41 = vmul.f32 16.0, %v227_v34 }
  0x8c   : > { %386 = vperm.xlu1 %1128, %v1554_v35   ;;  %1132 = vset.pattern.permute.xlu0 %v1328_v42  ;;  %v1637_v42 = vsub.f32 %v220_v17, %v228_v37 }
  0x8d   : > { %437 = vperm.xlu0 %1132, %v1554_v35  }
  0x8e   : > { %vm232_vm2 = vcmp.ge.f32.partialorder %v1637_v42, 3.0  ;;  %vm234_vm3 = vcmp.le.f32.partialorder %v1637_v42, 18.0  ;;  %vm251_vm5 = vcmp.ge.f32.partialorder %v1637_v42, 2.0  ;;  %vm253_vm6 = vcmp.le.f32.partialorder %v1637_v42, 17.0 }
  0x8f   : > { %vm270_vm8 = vcmp.ge.f32.partialorder %v1637_v42, 1.0  ;;  %vm272_vm9 = vcmp.le.f32.partialorder %v1637_v42, 16.0  ;;  %vm236_vm10 = vmand %vm232_vm2, %vm234_vm3 }
  0x90   : > { %1130 = vset.pattern.permute.xlu1 %v1329_v43  ;;  %vm255_vm0 = vmand %vm251_vm5, %vm253_vm6 }
  0x91   : > { %423 = vperm.xlu1 %1130, %v1554_v35   ;;  %1135 = vset.pattern.permute.xlu0 %v1330_v44  ;;  %vm274_vm1 = vmand %vm270_vm8, %vm272_vm9  ;;  %vm291_vm8 = vcmp.le.f32.partialorder %v1637_v42, 14.0  ;;  %vm299_vm9 = vcmp.lt.s32.totalorder %v1609_v12, 127 }
  0x92   : > { %445 = vperm.xlu0 %1135, %v1554_v35  }
  0x95   : > { %1131 = vset.pattern.permute.xlu1 %v1331_v45  ;;  %v1644_v45 = vsub.f32 %v221_v20, %v229_v41 }
  0x96   : > { %429 = vperm.xlu1 %1131, %v1554_v35   ;;  %1138 = vset.pattern.permute.xlu0 %v1332_v46  ;;  %v1365_v46 = vmov 47  }
  0x97   : > { %520 = vperm.xlu0 %1138, %v1554_v35   ;;  %vm233_vm12 = vcmp.ge.f32.partialorder %v1644_v45, 3.0  ;;  %vm235_vm13 = vcmp.le.f32.partialorder %v1644_v45, 18.0  ;;  %vm252_vm14 = vcmp.ge.f32.partialorder %v1644_v45, 2.0  ;;  %vm254_vm15 = vcmp.le.f32.partialorder %v1644_v45, 17.0 }
  0x98   : > { %vm271_vm2 = vcmp.ge.f32.partialorder %v1644_v45, 1.0  ;;  %vm237_vm3 = vmand %vm233_vm12, %vm235_vm13  ;;  %vm273_vm6 = vcmp.le.f32.partialorder %v1644_v45, 16.0  ;;  %vm318_vm12 = vcmp.lt.s32.totalorder %v1609_v12, 126 }
  0x99   : > { %vm256_vm5 = vmand %vm252_vm14, %vm254_vm15  ;;  %vm290_vm14 = vcmp.ge.f32.partialorder %v1644_v45, -1.0  ;;  %vm292_vm15 = vcmp.le.f32.partialorder %v1644_v45, 14.0 }
  0x9a   : > { %1133 = vset.pattern.permute.xlu1 %v1333_v47 }
  0x9b   : > { %498 = vperm.xlu1 %1133, %v1554_v35   ;;  %1141 = vset.pattern.permute.xlu0 %v1334_v48 }
  0x9c   : > { %461 = vperm.xlu0 %1141, %v1554_v35  }
  0x9f   : > { %1134 = vset.pattern.permute.xlu1 %v1335_v49 }
  0xa0   : > { %504 = vperm.xlu1 %1134, %v1554_v35   ;;  %1144 = vset.pattern.permute.xlu0 %v1336_v50 }
  0xa1   : > { %704 = vperm.xlu0 %1144, %v1554_v35  }
  0xa4   : > { %1136 = vset.pattern.permute.xlu1 %v1337_v51 }
  0xa5   : > { %512 = vperm.xlu1 %1136, %v1554_v35   ;;  %1147 = vset.pattern.permute.xlu0 %v1338_v52 }
  0xa6   : > { %536 = vperm.xlu0 %1147, %v1554_v35  }
  0xa9   : > { %1137 = vset.pattern.permute.xlu1 %v1339_v53 }
  0xaa   : > { %453 = vperm.xlu1 %1137, %v1554_v35   ;;  %1150 = vset.pattern.permute.xlu0 %v1340_v54 }
  0xab   : > { %779 = vperm.xlu0 %1150, %v1554_v35  }
  0xae   : > { %1139 = vset.pattern.permute.xlu1 %v1341_v55 }
  0xaf   : > { %629 = vperm.xlu1 %1139, %v1554_v35   ;;  %1153 = vset.pattern.permute.xlu0 %v1342_v56 }
  0xb0   : > { %659 = vperm.xlu0 %1153, %v1554_v35  }
  0xb3   : > { %1140 = vset.pattern.permute.xlu1 %v1343_v57 }
  0xb4   : > { %635 = vperm.xlu1 %1140, %v1554_v35   ;;  %1156 = vset.pattern.permute.xlu0 %v1344_v58 }
  0xb5   : > { %667 = vperm.xlu0 %1156, %v1554_v35  }
  0xb8   : > { %1142 = vset.pattern.permute.xlu1 %v1345_v59 }
  0xb9   : > { %528 = vperm.xlu1 %1142, %v1554_v35   ;;  %1159 = vset.pattern.permute.xlu0 %v1346_v60 }
  0xba   : > { %675 = vperm.xlu0 %1159, %v1554_v35  }
  0xbd   : > { %1143 = vset.pattern.permute.xlu1 %v1347_v61 }
  0xbe   : > { %643 = vperm.xlu1 %1143, %v1554_v35   ;;  %1162 = vset.pattern.permute.xlu0 %v1348_v62 }
  0xbf   : > { %750 = vperm.xlu0 %1162, %v1554_v35  }
  0xc2   : > { %1145 = vset.pattern.permute.xlu1 %v1349_v63 }
  0xc3   : > { %710 = vperm.xlu1 %1145, %v1554_v35   ;;  %1165 = vset.pattern.permute.xlu0 %v1350_v0  ;;  %v1366_v0 = vmov 22  }
  0xc4   : > { %573 = vperm.xlu0 %1165, %v1554_v35  }
  0xc7   : > { %1146 = vset.pattern.permute.xlu1 %v1351_v1 }
  0xc8   : > { %469 = vperm.xlu1 %1146, %v1554_v35   ;;  %1168 = vset.pattern.permute.xlu0 %v1352_v2 }
  0xc9   : > { %595 = vperm.xlu0 %1168, %v1554_v35  }
  0xcc   : > { %1148 = vset.pattern.permute.xlu1 %v1353_v3 }
  0xcd   : > { %651 = vperm.xlu1 %1148, %v1554_v35   ;;  %1171 = vset.pattern.permute.xlu0 %v1354_v4 }
  0xce   : > { %619 = vperm.xlu0 %1171, %v1554_v35  }
  0xd1   : > { %1149 = vset.pattern.permute.xlu1 %v1355_v5 }
  0xd2   : > { %718 = vperm.xlu1 %1149, %v1554_v35   ;;  %1172 = vset.pattern.permute.xlu0 %v1356_v6 }
  0xd6   : > { %1151 = vset.pattern.permute.xlu1 %v1357_v7 }
  0xd7   : > { %785 = vperm.xlu1 %1151, %v1554_v35  }
  0xd8   : > { %v1606_v10 = vpop.permute.xlu0 %238  ;;  %v1611_v13 = vpop.permute.xlu1 %257 }
  0xdb   : > { %1152 = vset.pattern.permute.xlu1 %v1358_v8 }
  0xdc   : > { %544 = vperm.xlu1 %1152, %v1554_v35   ;;  %v1613_v15 = vpop.permute.xlu0 %276 }
  0xe0   : > { %1154 = vset.pattern.permute.xlu1 %v1359_v11  ;;  %v1624_v21 = vpop.permute.xlu0 %295  ;;  %v1367_v11 = vmov 23  }
  0xe1   : > { %726 = vperm.xlu1 %1154, %v1554_v35  }
  0xe4   : > { %v1627_v27 = vpop.permute.xlu0 %314 }
  0xe5   : > { %1155 = vset.pattern.permute.xlu1 %v1360_v14 }
  0xe6   : > { %793 = vperm.xlu1 %1155, %v1554_v35  }
  0xe8   : > { %v1632_v38 = vpop.permute.xlu0 %333 }
  0xe9   : > { %v1620_v18 = vpop.permute.xlu1 %354 }
  0xea   : > { %1157 = vset.pattern.permute.xlu1 %v1361_v19 }
  0xeb   : > { %734 = vperm.xlu1 %1157, %v1554_v35  }
  0xec   : > { %v241_v43 = vpop.permute.xlu0 %240 }
  0xed   : > { %v260_v23 = vpop.permute.xlu1 %259  ;;  %v244_v47 = vsel %vm242_vm4, %v241_v43, %v1606_v10  ;;  %v243_v53 = vsel %vm242_vm4, %v1606_v10, %v241_v43  ;;  %vm275_vm4 = vmand %vm271_vm2, %vm273_vm6  ;;  %vm311_vm2 = vcmp.le.f32.partialorder %v1644_v45, 13.0  ;;  %vm329_vm6 = vcmp.le.f32.partialorder %v1637_v42, 12.0 }
  0xee   : > { %v263_v49 = vsel %vm261_vm7, %v260_v23, %v1611_v13  ;;  %v1663_v50 = vsel %vm236_vm10, %v244_v47, 0.0  ;;  %v262_v54 = vsel %vm261_vm7, %v1611_v13, %v260_v23  ;;  %v1683_v59 = vsel %vm237_vm3, %v243_v53, 0.0  ;;  %vm294_vm3 = vmand %vm290_vm14, %vm292_vm15 }
  0xef   : > { %1158 = vset.pattern.permute.xlu1 %v1362_v26  ;;  %v1677_v55 = vsel %vm255_vm0, %v263_v49, 0.0  ;;  %v1685_v60 = vsel %vm256_vm5, %v262_v54, 0.0  ;;  %vm289_vm7 = vcmp.ge.f32.partialorder %v1637_v42, -1.0  ;;  %vm308_vm10 = vcmp.ge.f32.partialorder %v1637_v42, -2.0 }
  0xf0   : > { %801 = vperm.xlu1 %1158, %v1554_v35   ;;  %v357_v62 = vmul.f32 %v1620_v18, %v1677_v55  ;;  %v358_v5 = vmul.f32 %v1620_v18, %v1685_v60  ;;  %vm293_vm13 = vmand %vm289_vm7, %vm291_vm8  ;;  %vm309_vm0 = vcmp.ge.f32.partialorder %v1644_v45, -2.0  ;;  %vm327_vm5 = vcmp.ge.f32.partialorder %v1637_v42, -3.0 }
  0xf1   : > { %v279_v28 = vpop.permute.xlu1 %278  ;;  %vm313_vm7 = vmand %vm309_vm0, %vm311_vm2  ;;  %v1368_v26 = vmov 25   ;;  %vm555_vm14 = vcmp.lt.s32.totalorder %v1609_v12, 16  ;;  %vm483_vm15 = vcmp.ge.s32.totalorder %v1609_v12, 32  ;;  %vm408_vm0 = vcmp.ge.s32.totalorder %v1609_v12, 48 }
  0xf2   : > { %v282_v52 = vsel %vm280_vm11, %v279_v28, %v1613_v15  ;;  %v281_v61 = vsel %vm280_vm11, %v1613_v15, %v279_v28  ;;  %vm310_vm11 = vcmp.le.f32.partialorder %v1637_v42, 13.0  ;;  %vm331_vm8 = vmand %vm327_vm5, %vm329_vm6  ;;  %v1369_v42 = vmov 26  }
  0xf3   : > { %v1681_v58 = vsel %vm274_vm1, %v282_v52, 0.0  ;;  %v1699_v4 = vsel %vm275_vm4, %v281_v61, 0.0  ;;  %vm312_vm1 = vmand %vm308_vm10, %vm310_vm11  ;;  %vm337_vm4 = vcmp.lt.s32.totalorder %v1609_v12, 125  ;;  %vm330_vm10 = vcmp.le.f32.partialorder %v1644_v45, 12.0 }
  0xf4   : > { %1160 = vset.pattern.permute.xlu1 %v1363_v31  ;;  %vm686_vm2 = vcmp.lt.s32.totalorder %v1609_v12, 112  ;;  %vm692_vm5 = vcmp.lt.s32.totalorder %v1617_v16, 240  ;;  %vm767_vm6 = vcmp.lt.s32.totalorder %v1617_v16, 224 }
  0xf5   : > { %742 = vperm.xlu1 %1160, %v1554_v35   ;;  %v1630_v33 = vpop.permute.xlu1 %297 }
  0xf6   : > { %v300_v7 = vsel %vm299_vm9, %v1624_v21, %v1630_v33  ;;  %v301_v15 = vsel %vm299_vm9, %v1630_v33, %v1624_v21  ;;  %vm328_vm9 = vcmp.ge.f32.partialorder %v1644_v45, -3.0 }
  0xf7   : > { %v1725_v17 = vsel %vm293_vm13, %v300_v7, 0.0  ;;  %v1742_v28 = vsel %vm294_vm3, %v301_v15, 0.0  ;;  %vm332_vm11 = vmand %vm328_vm9, %vm330_vm10  ;;  %vm405_vm13 = vcmp.lt.s32.totalorder %v1609_v12, 48  ;;  %vm761_vm3 = vcmp.lt.s32.totalorder %v1609_v12, 96 }
  0xf9   : > { %1161 = vset.pattern.permute.xlu1 %v1364_v39  ;;  %v1634_v40 = vpop.permute.xlu1 %316 }
  0xfa   : > { %809 = vperm.xlu1 %1161, %v1554_v35   ;;  %v319_v13 = vsel %vm318_vm12, %v1627_v27, %v1634_v40  ;;  %v320_v21 = vsel %vm318_vm12, %v1634_v40, %v1627_v27  ;;  %vm480_vm12 = vcmp.lt.s32.totalorder %v1609_v12, 32 }
  0xfb   : > { %v1730_v24 = vsel %vm312_vm1, %v319_v13, 0.0  ;;  %v1750_v34 = vsel %vm313_vm7, %v320_v21, 0.0  ;;  %vm558_vm1 = vcmp.ge.s32.totalorder %v1609_v12, 16  ;;  %vm842_vm7 = vcmp.lt.s32.totalorder %v1617_v16, 208 }
  0xfd   : > { %v1642_v44 = vpop.permute.xlu1 %335  ;;  %v349_v51 = vpop.permute.xlu0 %348 }
  0xfe   : > { %1163 = vset.pattern.permute.xlu1 %v1365_v46  ;;  %v351_v56 = vmul.f32 %v349_v51, %v1663_v50  ;;  %v352_v2 = vmul.f32 %v349_v51, %v1683_v59  ;;  %v338_v29 = vsel %vm337_vm4, %v1632_v38, %v1642_v44  ;;  %v339_v43 = vsel %vm337_vm4, %v1642_v44, %v1632_v38 }
  0xff   : > { %817 = vperm.xlu1 %1163, %v1554_v35   ;;  %v1755_v41 = vsel %vm331_vm8, %v338_v29, 0.0  ;;  %v1763_v51 = vsel %vm332_vm11, %v339_v43, 0.0  ;;  %vm836_vm4 = vcmp.lt.s32.totalorder %v1609_v12, 80  ;;  %vm853_vm8 = vcmask 1041408  }
 0x100   : > { %v359_v3 = vadd.f32 %v357_v62, %v351_v56  ;;  %v360_v14 = vadd.f32 %v358_v5, %v352_v2 }
 0x101   : > { %v363_v48 = vpop.permute.xlu1 %362 }
 0x102   : > { %v365_v63 = vmul.f32 %v363_v48, %v1681_v58  ;;  %v371_v1 = vpop.permute.xlu0 %370  ;;  %v366_v8 = vmul.f32 %v363_v48, %v1699_v4 }
 0x103   : > { %1164 = vset.pattern.permute.xlu1 %v1356_v6  ;;  %v373_v10 = vmul.f32 %v371_v1, %v1550_v32  ;;  %v374_v19 = vmul.f32 %v371_v1, %v1558_v36 }
 0x104   : > { %825 = vperm.xlu1 %1164, %v1554_v35   ;;  %v367_v9 = vadd.f32 %v365_v63, %v359_v3  ;;  %v368_v18 = vadd.f32 %v366_v8, %v360_v14 }
 0x106   : > { %v379_v57 = vpop.permute.xlu1 %378  ;;  %v375_v20 = vadd.f32 %v373_v10, %v367_v9  ;;  %v376_v30 = vadd.f32 %v374_v19, %v368_v18 }
 0x107   : > { %v381_v22 = vmul.f32 %v379_v57, %v1725_v17  ;;  %v382_v31 = vmul.f32 %v379_v57, %v1742_v28  ;;  %v395_v27 = vpop.permute.xlu0 %394 }
 0x108   : > { %1166 = vset.pattern.permute.xlu1 %v1366_v0  ;;  %v397_v47 = vmul.f32 %v395_v27, %v1755_v41  ;;  %v398_v52 = vmul.f32 %v395_v27, %v1763_v51 }
 0x109   : > { %579 = vperm.xlu1 %1166, %v1554_v35   ;;  %v383_v33 = vadd.f32 %v381_v22, %v375_v20  ;;  %v384_v46 = vadd.f32 %v382_v31, %v376_v30 }
 0x10b   : > { %v387_v6 = vpop.permute.xlu1 %386 }
 0x10c   : > { %v389_v25 = vmul.f32 %v387_v6, %v1730_v24  ;;  %v390_v39 = vmul.f32 %v387_v6, %v1750_v34  ;;  %v438_v57 = vpop.permute.xlu0 %437 }
 0x10d   : > { %1167 = vset.pattern.permute.xlu1 %v1367_v11  ;;  %v440_v8 = vmul.f32 %v438_v57, %v1681_v58  ;;  %v441_v9 = vmul.f32 %v438_v57, %v1699_v4 }
 0x10e   : > { %587 = vperm.xlu1 %1167, %v1554_v35   ;;  %v391_v40 = vadd.f32 %v389_v25, %v383_v33  ;;  %v392_v45 = vadd.f32 %v390_v39, %v384_v46 }
 0x110   : > { %v424_v23 = vpop.permute.xlu1 %423  ;;  %v399_v49 = vadd.f32 %v397_v47, %v391_v40  ;;  %v400_v53 = vadd.f32 %v398_v52, %v392_v45 }
 0x111   : > { %v446_v44 = vpop.permute.xlu0 %445  ;;  %v426_v1 = vmul.f32 %v424_v23, %v1663_v50  ;;  %v427_v2 = vmul.f32 %v424_v23, %v1683_v59 }
 0x112   : > { %1169 = vset.pattern.permute.xlu1 %v1368_v26  ;;  %v448_v11 = vmul.f32 %v446_v44, %v1550_v32  ;;  %v449_v13 = vmul.f32 %v446_v44, %v1558_v36 }
 0x113   : > { %603 = vperm.xlu1 %1169, %v1554_v35  }
 0x115   : > { %v430_v37 = vpop.permute.xlu1 %429 }
 0x116   : > { %v521_v62 = vpop.permute.xlu0 %520  ;;  %v433_v0 = vmul.f32 %v430_v37, %v1685_v60 }
 0x117   : > { %1170 = vset.pattern.permute.xlu1 %v1369_v42 }
 0x118   : > { %611 = vperm.xlu1 %1170, %v1554_v35   ;;  %v432_v35 = vmul.f32 %v430_v37, %v1677_v55  ;;  %v435_v7 = vadd.f32 %v433_v0, %v427_v2 }
 0x11a   : > { %v499_v48 = vpop.permute.xlu1 %498  ;;  %v434_v6 = vadd.f32 %v432_v35, %v426_v1  ;;  %v443_v15 = vadd.f32 %v441_v9, %v435_v7  ;;  %v524_v7 = vmul.f32 %v521_v62, %v1558_v36 }
 0x11b   : > { %v462_v5 = vpop.permute.xlu0 %461  ;;  %v501_v52 = vmul.f32 %v499_v48, %v1663_v50 }
 0x11c   : > { %401 = vrot.lane.b32.xlu1 %v399_v49, %s1370_s29  ;;  %v442_v14 = vadd.f32 %v440_v8, %v434_v6  ;;  %v451_v23 = vadd.f32 %v449_v13, %v443_v15  ;;  %v464_v30 = vmul.f32 %v462_v5, %v1730_v24  ;;  %v465_v31 = vmul.f32 %v462_v5, %v1750_v34 }
 0x11e   : > { %v450_v22 = vadd.f32 %v448_v11, %v442_v14 }
 0x11f   : > { %v505_v54 = vpop.permute.xlu1 %504 }
 0x120   : > { %403 = vrot.lane.b32.xlu1 %v400_v53, %s1370_s29  ;;  %v1774_v18 = vpop.permute.xlu0 %704  ;;  %v507_v46 = vmul.f32 %v505_v54, %v1677_v55  ;;  %v508_v47 = vmul.f32 %v505_v54, %v1685_v60  ;;  %v502_v53 = vmul.f32 %v499_v48, %v1683_v59  ;;  %v523_v48 = vmul.f32 %v521_v62, %v1550_v32 }
 0x122   : > { %v509_v0 = vadd.f32 %v507_v46, %v501_v52  ;;  %v510_v54 = vadd.f32 %v508_v47, %v502_v53 }
 0x124   : > { %v513_v56 = vpop.permute.xlu1 %512 }
 0x125   : > { %v537_v29 = vpop.permute.xlu0 %536  ;;  %v515_v57 = vmul.f32 %v513_v56, %v1681_v58 }
 0x127   : > { %v517_v8 = vadd.f32 %v515_v57, %v509_v0 }
 0x129   : > { %v454_v38 = vpop.permute.xlu1 %453 }
 0x12a   : > { %v456_v19 = vmul.f32 %v454_v38, %v1725_v17  ;;  %v457_v20 = vmul.f32 %v454_v38, %v1742_v28  ;;  %v1786_v45 = vpop.permute.xlu0 %779  ;;  %v516_v38 = vmul.f32 %v513_v56, %v1699_v4 }
 0x12c   : > { %v458_v25 = vadd.f32 %v456_v19, %v450_v22  ;;  %v459_v26 = vadd.f32 %v457_v20, %v451_v23  ;;  %v518_v56 = vadd.f32 %v516_v38, %v510_v54  ;;  %v525_v22 = vadd.f32 %v523_v48, %v517_v8 }
 0x12e   : > { %v630_v61 = vpop.permute.xlu1 %629  ;;  %v466_v27 = vadd.f32 %v464_v30, %v458_v25  ;;  %v467_v37 = vadd.f32 %v465_v31, %v459_v26  ;;  %v526_v23 = vadd.f32 %v524_v7, %v518_v56 }
 0x12f   : > { %v632_v1 = vmul.f32 %v630_v61, %v1663_v50  ;;  %v633_v2 = vmul.f32 %v630_v61, %v1683_v59  ;;  %v660_v9 = vpop.permute.xlu0 %659 }
 0x130   : > { %v662_v31 = vmul.f32 %v660_v9, %v1725_v17 }
 0x133   : > { %v636_v63 = vpop.permute.xlu1 %635 }
 0x134   : > { %v638_v44 = vmul.f32 %v636_v63, %v1677_v55  ;;  %v639_v35 = vmul.f32 %v636_v63, %v1685_v60  ;;  %v668_v30 = vpop.permute.xlu0 %667 }
 0x135   : > { %v671_v46 = vmul.f32 %v668_v30, %v1750_v34 }
 0x136   : > { %v640_v13 = vadd.f32 %v638_v44, %v632_v1  ;;  %v641_v63 = vadd.f32 %v639_v35, %v633_v2 }
 0x138   : > { %v529_v3 = vpop.permute.xlu1 %528 }
 0x139   : > { %v531_v61 = vmul.f32 %v529_v3, %v1725_v17  ;;  %v532_v19 = vmul.f32 %v529_v3, %v1742_v28  ;;  %v676_v38 = vpop.permute.xlu0 %675 }
 0x13a   : > { %v679_v1 = vmul.f32 %v676_v38, %v1763_v51 }
 0x13d   : > { %v644_v10 = vpop.permute.xlu1 %643 }
 0x13e   : > { %v646_v5 = vmul.f32 %v644_v10, %v1681_v58  ;;  %v647_v6 = vmul.f32 %v644_v10, %v1699_v4 }
 0x140   : > { %v648_v20 = vadd.f32 %v646_v5, %v640_v13  ;;  %v649_v10 = vadd.f32 %v647_v6, %v641_v63  ;;  %v708_v13 = vmul.f32 %v1774_v18, %v1683_v59 }
 0x142   : > { %v1778_v21 = vpop.permute.xlu1 %710 }
 0x143   : > { %v713_v8 = vmul.f32 %v1778_v21, %v1677_v55  ;;  %v714_v56 = vmul.f32 %v1778_v21, %v1685_v60 }
 0x147   : > { %v470_v33 = vpop.permute.xlu1 %469 }
 0x148   : > { %v472_v39 = vmul.f32 %v470_v33, %v1755_v41  ;;  %v473_v40 = vmul.f32 %v470_v33, %v1763_v51  ;;  %v663_v33 = vmul.f32 %v660_v9, %v1742_v28  ;;  %v707_v9 = vmul.f32 %v1774_v18, %v1663_v50  ;;  %v751_v18 = vpop.permute.xlu0 %750 }
 0x14a   : > { %v474_v42 = vadd.f32 %v472_v39, %v466_v27  ;;  %v475_v43 = vadd.f32 %v473_v40, %v467_v37  ;;  %v533_v27 = vadd.f32 %v531_v61, %v525_v22  ;;  %v534_v37 = vadd.f32 %v532_v19, %v526_v23 }
 0x14b   : > { %v539_v39 = vmul.f32 %v537_v29, %v1730_v24  ;;  %v540_v40 = vmul.f32 %v537_v29, %v1750_v34  ;;  %v678_v29 = vmul.f32 %v676_v38, %v1755_v41  ;;  %v716_v61 = vadd.f32 %v714_v56, %v708_v13 }
 0x14c   : > { %v652_v49 = vpop.permute.xlu1 %651  ;;  %478 = vrot.lane.b32.xlu1 %v475_v43, %s1371_s30  ;;  %476 = vrot.lane.b32.xlu0 %v474_v42, %s1371_s30  ;;  %v670_v43 = vmul.f32 %v668_v30, %v1730_v24 }
 0x14d   : > { %v654_v14 = vmul.f32 %v652_v49, %v1550_v32  ;;  %v655_v15 = vmul.f32 %v652_v49, %v1558_v36  ;;  %v541_v49 = vadd.f32 %v539_v39, %v533_v27  ;;  %v542_v52 = vadd.f32 %v540_v40, %v534_v37 }
 0x14e   : > { %v753_v39 = vmul.f32 %v751_v18, %v1755_v41  ;;  %v754_v40 = vmul.f32 %v751_v18, %v1763_v51 }
 0x14f   : > { %v656_v25 = vadd.f32 %v654_v14, %v648_v20  ;;  %v657_v62 = vadd.f32 %v655_v15, %v649_v10  ;;  %v715_v15 = vadd.f32 %v713_v8, %v707_v9 }
 0x151   : > { %v719_v11 = vpop.permute.xlu1 %718  ;;  %v664_v3 = vadd.f32 %v662_v31, %v656_v25  ;;  %v665_v42 = vadd.f32 %v663_v33, %v657_v62 }
 0x152   : > { %v721_v63 = vmul.f32 %v719_v11, %v1681_v58  ;;  %v722_v14 = vmul.f32 %v719_v11, %v1699_v4 }
 0x153   : > { %v673_v0 = vadd.f32 %v671_v46, %v665_v42  ;;  %v672_v54 = vadd.f32 %v670_v43, %v664_v3 }
 0x154   : > { %v723_v22 = vadd.f32 %v721_v63, %v715_v15  ;;  %v724_v23 = vadd.f32 %v722_v14, %v716_v61 }
 0x155   : > { %v681_v5 = vadd.f32 %v679_v1, %v673_v0  ;;  %v680_v6 = vadd.f32 %v678_v29, %v672_v54 }
 0x156   : > { %v1804_v26 = vpop.permute.xlu1 %785 }
 0x157   : > { %v788_v43 = vmul.f32 %v1804_v26, %v1677_v55  ;;  %v789_v46 = vmul.f32 %v1804_v26, %v1685_v60 }
 0x15b   : > { %v545_v47 = vpop.permute.xlu1 %544 }
 0x15c   : > { %v547_v53 = vmul.f32 %v545_v47, %v1755_v41  ;;  %v548_v57 = vmul.f32 %v545_v47, %v1763_v51 }
 0x15e   : > { %v549_v44 = vadd.f32 %v547_v53, %v541_v49  ;;  %v550_v35 = vadd.f32 %v548_v57, %v542_v52  ;;  %v782_v53 = vmul.f32 %v1786_v45, %v1663_v50  ;;  %v783_v57 = vmul.f32 %v1786_v45, %v1683_v59 }
 0x160   : > { %v727_v2 = vpop.permute.xlu1 %726  ;;  %553 = vrot.lane.b32.xlu1 %v550_v35, %s1372_s3  ;;  %551 = vrot.lane.b32.xlu0 %v549_v44, %s1372_s3  ;;  %v790_v35 = vadd.f32 %v788_v43, %v782_v53  ;;  %v791_v0 = vadd.f32 %v789_v46, %v783_v57 }
 0x161   : > { %v729_v19 = vmul.f32 %v727_v2, %v1550_v32  ;;  %v730_v20 = vmul.f32 %v727_v2, %v1558_v36 }
 0x163   : > { %v731_v62 = vadd.f32 %v729_v19, %v723_v22  ;;  %v732_v30 = vadd.f32 %v730_v20, %v724_v23 }
 0x164   : > { %684 = vrot.lane.b32.xlu1 %v681_v5, %s1373_s4  ;;  %682 = vrot.lane.b32.xlu0 %v680_v6, %s1373_s4 }
 0x165   : > { %v794_v48 = vpop.permute.xlu1 %793 }
 0x166   : > { %v796_v38 = vmul.f32 %v794_v48, %v1681_v58  ;;  %v797_v44 = vmul.f32 %v794_v48, %v1699_v4 }
 0x168   : > { %v798_v29 = vadd.f32 %v796_v38, %v790_v35  ;;  %v799_v1 = vadd.f32 %v797_v44, %v791_v0 }
 0x16a   : > { %v735_v7 = vpop.permute.xlu1 %734 }
 0x16b   : > { %v737_v21 = vmul.f32 %v735_v7, %v1725_v17  ;;  %v738_v25 = vmul.f32 %v735_v7, %v1742_v28 }
 0x16d   : > { %v739_v33 = vadd.f32 %v737_v21, %v731_v62  ;;  %v740_v27 = vadd.f32 %v738_v25, %v732_v30  ;;  %v574_v25 = vpop.permute.xlu0 %573 }
 0x16f   : > { %v802_v10 = vpop.permute.xlu1 %801 }
 0x170   : > { %v804_v26 = vmul.f32 %v802_v10, %v1550_v32  ;;  %v805_v54 = vmul.f32 %v802_v10, %v1558_v36 }
 0x171   : > { %v596_v62 = vpop.permute.xlu0 %595 }
 0x172   : > { %v806_v6 = vadd.f32 %v804_v26, %v798_v29  ;;  %v807_v7 = vadd.f32 %v805_v54, %v799_v1 }
 0x174   : > { %v743_v31 = vpop.permute.xlu1 %742 }
 0x175   : > { %v745_v11 = vmul.f32 %v743_v31, %v1730_v24  ;;  %v746_v37 = vmul.f32 %v743_v31, %v1750_v34  ;;  %v620_v31 = vpop.permute.xlu0 %619 }
 0x177   : > { %v747_v3 = vadd.f32 %v745_v11, %v739_v33  ;;  %v748_v42 = vadd.f32 %v746_v37, %v740_v27  ;;  %v576_v11 = vmul.f32 %v574_v25, %v1663_v50 }
 0x179   : > { %v810_v47 = vpop.permute.xlu1 %809  ;;  %v756_v49 = vadd.f32 %v754_v40, %v748_v42  ;;  %v755_v52 = vadd.f32 %v753_v39, %v747_v3  ;;  %v577_v39 = vmul.f32 %v574_v25, %v1683_v59 }
 0x17a   : > { %v812_v2 = vmul.f32 %v810_v47, %v1725_v17  ;;  %v813_v5 = vmul.f32 %v810_v47, %v1742_v28  ;;  %v598_v47 = vmul.f32 %v596_v62, %v1550_v32 }
 0x17b   : > { %759 = vrot.lane.b32.xlu1 %v756_v49, %s1374_s5  ;;  %757 = vrot.lane.b32.xlu0 %v755_v52, %s1374_s5 }
 0x17c   : > { %v814_v56 = vadd.f32 %v812_v2, %v806_v6  ;;  %v815_v9 = vadd.f32 %v813_v5, %v807_v7  ;;  %v622_v7 = vmul.f32 %v620_v31, %v1755_v41 }
 0x17e   : > { %v818_v45 = vpop.permute.xlu1 %817 }
 0x17f   : > { %v820_v48 = vmul.f32 %v818_v45, %v1730_v24  ;;  %v821_v8 = vmul.f32 %v818_v45, %v1750_v34 }
 0x181   : > { %v822_v63 = vadd.f32 %v820_v48, %v814_v56  ;;  %v823_v14 = vadd.f32 %v821_v8, %v815_v9  ;;  %v623_v8 = vmul.f32 %v620_v31, %v1763_v51 }
 0x183   : > { %v826_v13 = vpop.permute.xlu1 %825 }
 0x184   : > { %v828_v15 = vmul.f32 %v826_v13, %v1755_v41  ;;  %v829_v61 = vmul.f32 %v826_v13, %v1763_v51 }
 0x186   : > { %v830_v19 = vadd.f32 %v828_v15, %v822_v63  ;;  %v831_v20 = vadd.f32 %v829_v61, %v823_v14 }
 0x188   : > { %834 = vrot.lane.b32.xlu1 %v831_v20, %s1375_s6  ;;  %832 = vrot.lane.b32.xlu0 %v830_v19, %s1375_s6  ;;  %v580_v10 = vpop.permute.xlu1 %579 }
 0x189   : > { %v582_v18 = vmul.f32 %v580_v10, %v1677_v55  ;;  %v583_v33 = vmul.f32 %v580_v10, %v1685_v60  ;;  %v599_v55 = vmul.f32 %v596_v62, %v1558_v36 }
 0x18b   : > { %v584_v3 = vadd.f32 %v582_v18, %v576_v11  ;;  %v585_v42 = vadd.f32 %v583_v33, %v577_v39 }
 0x18d   : > { %v588_v22 = vpop.permute.xlu1 %587 }
 0x18e   : > { %v590_v37 = vmul.f32 %v588_v22, %v1681_v58  ;;  %v591_v40 = vmul.f32 %v588_v22, %v1699_v4 }
 0x190   : > { %v592_v49 = vadd.f32 %v590_v37, %v584_v3  ;;  %v593_v52 = vadd.f32 %v591_v40, %v585_v42 }
 0x192   : > { %v604_v23 = vpop.permute.xlu1 %603  ;;  %v600_v59 = vadd.f32 %v598_v47, %v592_v49  ;;  %v601_v4 = vadd.f32 %v599_v55, %v593_v52 }
 0x193   : > { %v606_v60 = vmul.f32 %v604_v23, %v1725_v17  ;;  %v607_v36 = vmul.f32 %v604_v23, %v1742_v28 }
 0x195   : > { %v608_v35 = vadd.f32 %v606_v60, %v600_v59  ;;  %v609_v28 = vadd.f32 %v607_v36, %v601_v4 }
 0x197   : > { %v612_v21 = vpop.permute.xlu1 %611 }
 0x198   : > { %v614_v53 = vmul.f32 %v612_v21, %v1730_v24  ;;  %v615_v38 = vmul.f32 %v612_v21, %v1750_v34 }
 0x19a   : > { %v616_v29 = vadd.f32 %v614_v53, %v608_v35  ;;  %v617_v6 = vadd.f32 %v615_v38, %v609_v28 }
 0x19b   : > { %v402_v30 = vpop.permute.xlu1 %401 }
 0x19c   : > { %v624_v9 = vadd.f32 %v622_v7, %v616_v29  ;;  %v625_v14 = vadd.f32 %v623_v8, %v617_v6 }
 0x19f   : > { %v404_v27 = vpop.permute.xlu1 %403 }
 0x1a0   : > { %v407_v57 = vsel %vm405_vm13, %v404_v27, %v402_v30  ;;  %v406_v24 = vsel %vm405_vm13, %v402_v30, %v404_v27 }
 0x1a1   : > { %v418_v26 = vsel %vm408_vm0, %v407_v57, 0.0 }
 0x1be   : > { %v479_v43 = vpop.permute.xlu1 %478  ;;  %v477_v46 = vpop.permute.xlu0 %476 }
 0x1bf   : > { %v482_v32 = vsel %vm480_vm12, %v479_v43, %v477_v46  ;;  %v481_v0 = vsel %vm480_vm12, %v477_v46, %v479_v43 }
 0x1c0   : > { %v493_v44 = vsel %vm483_vm15, %v482_v32, 0.0  ;;  %v496_v34 = vadd.f32 %v481_v0, %v406_v24 }
 0x1c1   : > { %v495_v1 = vadd.f32 %v493_v44, %v418_v26  ;;  %v1182_v44 = vld [vmem:[%s1543_s19] sm:$0xff]  ;;  %s1247_s19 = scalar_lea.vmem %s1246_s25, 256 }
 0x1c2   : > { %p1249_p0 = scmp.lt.s32.totalorder %s1247_s19, %s1241_s26 }
 0x1c4   : > { %p1250_p5 = por %p1249_p0, %p1248_p13 }
 0x1c6   : > { %p1251_p10 = pnand %p1250_p5, %p1244_p12 }
 0x1d2   : > { %v554_v50 = vpop.permute.xlu1 %553  ;;  %v552_v58 = vpop.permute.xlu0 %551 }
 0x1d3   : > { %v557_v17 = vsel %vm555_vm14, %v554_v50, %v552_v58  ;;  %v556_v2 = vsel %vm555_vm14, %v552_v58, %v554_v50 }
 0x1d4   : > { %v568_v54 = vsel %vm558_vm1, %v557_v17, 0.0  ;;  %v571_v56 = vadd.f32 %v556_v2, %v496_v34 }
 0x1d5   : > { %v570_v48 = vadd.f32 %v568_v54, %v495_v1 }
 0x1d6   : > { %v685_v5 = vpop.permute.xlu1 %684  ;;  %v683_v45 = vpop.permute.xlu0 %682  ;;  %v627_v19 = vadd.f32 %v625_v14, %v571_v56 }
 0x1d7   : > { %v688_v15 = vsel %vm686_vm2, %v685_v5, %v683_v45  ;;  %v626_v61 = vadd.f32 %v624_v9, %v570_v48  ;;  %v687_v20 = vsel %vm686_vm2, %v683_v45, %v685_v5 }
 0x1d8   : > { %v700_v10 = vsel %vm692_vm5, %v688_v15, 0.0 }
 0x1d9   : > { %v701_v23 = vadd.f32 %v687_v20, %v626_v61  ;;  %v702_v21 = vadd.f32 %v700_v10, %v627_v19 }
 0x1ed   : > { %v760_v13 = vpop.permute.xlu1 %759  ;;  %v758_v63 = vpop.permute.xlu0 %757 }
 0x1ee   : > { %v763_v41 = vsel %vm761_vm3, %v760_v13, %v758_v63  ;;  %v762_v22 = vsel %vm761_vm3, %v758_v63, %v760_v13 }
 0x1ef   : > { %v775_v51 = vsel %vm767_vm6, %v763_v41, 0.0  ;;  %v776_v25 = vadd.f32 %v762_v22, %v701_v23 }
 0x1f0   : > { %v777_v18 = vadd.f32 %v775_v51, %v702_v21 }
 0x1fa   : > { %v835_v62 = vpop.permute.xlu1 %834  ;;  %v833_v30 = vpop.permute.xlu0 %832 }
 0x1fb   : > { %v837_v31 = vsel %vm836_vm4, %v833_v30, %v835_v62  ;;  %v838_v33 = vsel %vm836_vm4, %v835_v62, %v833_v30 }
 0x1fc   : > { %v850_v27 = vsel %vm842_vm7, %v838_v33, 0.0  ;;  %v851_v11 = vadd.f32 %v837_v31, %v776_v25 }
 0x1fd   : > { %v852_v37 = vadd.f32 %v850_v27, %v777_v18 }
 0x1fe   : > { %v854_v39 = vsel %vm853_vm8, %v851_v11, 0.0 }
 0x1ff   : > { %v855_v40 = vrot.slane %v854_v39, 4  ;;  %v861_v3 = vsel %vm853_vm8, %v852_v37, 0.0 }
 0x200   : > { %v862_v42 = vrot.slane %v861_v3, 4 }
 0x201   : > { %v856_v43 = vadd.f32 %v855_v40, %v854_v39 }
 0x202   : > { %v863_v46 = vadd.f32 %v862_v42, %v861_v3 }
 0x203   : > { %v857_v12 = vrot.slane %v856_v43, 2 }
 0x204   : > { %v864_v47 = vrot.slane %v863_v46, 2 }
 0x205   : > { %v858_v49 = vadd.f32 %v857_v12, %v856_v43 }
 0x206   : > { %v865_v16 = vadd.f32 %v864_v47, %v863_v46 }
 0x207   : > { %v859_v55 = vrot.slane %v858_v49, 1 }
 0x208   : > { %v866_v52 = vrot.slane %v865_v16, 1 }
 0x209   : > { %v860_v50 = vadd.f32 %v859_v55, %v858_v49 }
 0x20a   : > { %v867_v58 = vadd.f32 %v866_v52, %v865_v16 }
 0x20b   : > { %v996_v59 = vmul.f32 -1.442695, %v860_v50 }
 0x20c   : > { %v997_v60 = vmul.f32 -1.442695, %v867_v58 }
 0x20d   : > { %1174 = vpow2.f32 %v996_v59 }
 0x20e   : > { %1176 = vpow2.f32 %v997_v60 }
 0x217   : > { %v1175_v32 = vpop.eup %1174 }
 0x218   : > { %v1177_v4 = vpop.eup %1176  ;;  %v874_v36 = vadd.f32 1.0, %v1175_v32 }
 0x219   : > { %v875_v53 = vadd.f32 1.0, %v1177_v4 }
 0x21a   : > { %1178 = vrcp.f32 %v874_v36 }
 0x21b   : > { %1180 = vrcp.f32 %v875_v53 }
 0x224   : > { %v1179_v57 = vpop.eup %1178 }
 0x225   : > { %v1181_v17 = vpop.eup %1180 }
 0x226   : > { %v882_v38 = vcombine.low %v1179_v57, %v1181_v17 }
 0x228   : > { %v884_v35 = vmul.f32 %v1182_v44, %v882_v38 }
 0x22a   : > { %887 = vst [vmem:[%s172_s18] sm:$0xff] %v884_v35 }
 0x22b   : > { %1254 = shalt.err (!%p1251_p10)
}
 0x22c   : > { %s1255_s22 = scalar_lea.hbm %s1897_s17, 128  ;;  %s1259_s29 = scalar_lea.hbm %s1943_s2, 256 }
 0x22d   : > { %p1256_p1 = scmp.ne.s32.totalorder %s1897_s17, %s1255_s22  ;;  %p1260_p3 = scmp.lt.u32.totalorder %s1897_s17, %s1943_s2 }
 0x22e   : > { %p1261_p4 = scmp.lt.u32.totalorder %s1259_s29, %s1255_s22  ;;  %p1263_p6 = scmp.lt.u32.totalorder %s1255_s22, %s1897_s17 }
 0x22f   : > { %p1257_p2 = pnand %p1256_p1, %p1484_p8 }
 0x230   : > { %p1262_p11 = por %p1261_p4, %p1260_p3 }
 0x231   : > { %p1258_p7 = pneg %p1257_p2 }
 0x232   : > { %p1264_p9 = por %p1263_p6, %p1262_p11 }
 0x234   : > { %p1265_p12 = pnand %p1264_p9, %p1258_p7 }
 0x236   : > { %1268 = shalt.err (!%p1265_p12)
}
 0x237   : > { %1011 = dma.vmem_to_hbm [thread:$0]  (%p1484_p8), %s1899_s21, 128, %s1897_s17, %s889_s24  }
 0x238 PF: > { %s915_s4 = sand.u32 1, %s1299_s9   ;;  %p1962_p13 = scmp.ne.s32.totalorder %s1948_s16, 0 }
 0x239   : > { %p1963_p0 = scmp.ge.s32.totalorder %s1311_s12, 2  ;;  %s916_s5 = scalar_lea.sflag [#allocation4], %s915_s4 }
 0x23b   : > { %p1022_p5 = pnand %p1963_p0, %p1962_p13 }
 0x23d   : > { %1294 = dma.done.wait (!%p1022_p5), %s916_s5, 128  }
 0x23e   : > { %1296 = vsyncadd (!%p1022_p5), %s916_s5, 4294967168  ;;  %p16_p10 = scmp.ge.s32.totalorder %s1440_s20, 4   ;;  %s1964_s9 = smov %s1303_s10 }
 0x23f   : > { %s1965_s10 = smov %s1307_s11  ;;  %s1966_s11 = smov %s1476_s7 }
 0x240   : > { %s1967_s12 = smov %s1440_s20  ;;  %18 = sbr.rel (!%p16_p10) target bundleno = 6 (0x6), region = 80 }
 0x247   :  { %921 = vsyncpa [#allocation3], 1 }
 0x248   :  { %923 = vsyncpa [#allocation3 + $0x1], 1 }
 0x249   :  { %924 = vsyncpa [#allocation6], 1 }
 0x24a   :  { %926 = vsyncpa [#allocation6 + $0x1], 1 }
 0x24b   :  { %927 = vsyncpa [#allocation4], 1 }
 0x24c   :  { %929 = vsyncpa [#allocation4 + $0x1], 1 }

</bundles_post_ra>
